<compile_context>
chip_gen: v5e
topology: v5e:2x2
jax: 0.10.0
libtpu: 0.0.40
codegen_flags: <defaults>
</compile_context>

<pallas_src>
import jax
import jax.numpy as jnp
from jax import lax
from jax.experimental import pallas as pl
from jax.experimental.pallas import tpu as pltpu


# -----------------------------------------------------------------------------
# Wrapper + fused kernel
# -----------------------------------------------------------------------------
def maff_forward_pallas(x1, x2, params):
    """x1, x2: NCHW (B, C//2, H, W), like the PyTorch module. Returns NCHW."""
    B, Ch, H, W = x1.shape
    C = 2 * Ch
    P = H * W
    half = C // 2
    Cr = params['w1'].shape[1]
    Co = params['cw2'].shape[3]

    # Free (metadata-only) reshapes of the contiguous NCHW inputs.
    x1f = x1.reshape(B, Ch, P).astype(jnp.float32)
    x2f = x2.reshape(B, Ch, P).astype(jnp.float32)

    # BatchNorm2d training-mode batch statistics per channel-half; two-pass
    # variance (robust to large means), no concat/transpose on the XLA side.
    m1 = jnp.mean(x1f, axis=(0, 2))
    m2 = jnp.mean(x2f, axis=(0, 2))
    v1 = jnp.mean((x1f - m1[None, :, None]) ** 2, axis=(0, 2))
    v2 = jnp.mean((x2f - m2[None, :, None]) ** 2, axis=(0, 2))
    mean = jnp.concatenate([m1, m2])
    var = jnp.concatenate([v1, v2])
    inv_std = lax.rsqrt(var + 1e-5)
    bn_scale = (params['bn_gamma'] * inv_std).reshape(C, 1)
    bn_shift = (params['bn_beta']
                - params['bn_gamma'] * mean * inv_std).reshape(C, 1)

    # conv_du (1x1) weights in (Cin, Cout) orientation so the MLP runs on the
    # VPU/XLU as broadcast-multiply + reduce (no degenerate-M/N MXU pushes).
    w1 = params['w1']                                 # (C, Cr)
    b1 = params['b1'].reshape(1, Cr)
    w2t = jnp.transpose(params['w2'])                 # (C, Cr)
    b2 = params['b2'].reshape(C, 1)

    # 3x3 weights pre-reshaped to dense (Cout, 9*Cin) im2col matrices, cast to
    # bf16 for the MXU (f32 accumulation in the kernel).
    cw1m = jnp.transpose(params['cw1'].reshape(9 * C, C)).astype(jnp.bfloat16)
    cb1 = params['cb1'].reshape(C, 1)
    cw2m = jnp.transpose(params['cw2'].reshape(9 * C, Co)).astype(jnp.bfloat16)
    cb2 = params['cb2'].reshape(Co, 1)

    # Hoisted edge masks for the 9 taps (shared by both convs and all grid
    # steps): (9, P) {0,1} f32.
    offs = [(dy, dx) for dy in (-1, 0, 1) for dx in (-1, 0, 1)]
    py = jnp.arange(P, dtype=jnp.int32) // W
    px = jnp.arange(P, dtype=jnp.int32) % W
    masks = jnp.stack(
        [((py + dy >= 0) & (py + dy < H) & (px + dx >= 0) & (px + dx < W)
          ).astype(jnp.float32) for dy, dx in offs], axis=0)         # (9, P)

    def kernel(x1_ref, x2_ref, bns_ref, bnb_ref,
               w1_ref, b1_ref, w2t_ref, b2_ref,
               cw1_ref, cb1_ref, cw2_ref, cb2_ref, mask_ref,
               o_ref, xn_ref, patch_ref):
        bns = bns_ref[...]                                           # (C, 1)
        bnb = bnb_ref[...]
        # BN + ReLU once; halves written straight into the (C, P) scratch
        # (no concatenated copy).
        xn_ref[pl.ds(0, half), :] = jnp.maximum(
            x1_ref[0] * bns[:half] + bnb[:half], 0.0)
        xn_ref[pl.ds(half, half), :] = jnp.maximum(
            x2_ref[0] * bns[half:] + bnb[half:], 0.0)
        xn = xn_ref[...]                                             # (C, P)

        # ---- channel attention (avg_pool + conv_du + half-channel means) ----
        pooled = jnp.mean(xn, axis=1, keepdims=True)                 # (C, 1)
        h = jnp.maximum(
            jnp.sum(pooled * w1_ref[...], axis=0, keepdims=True)
            + b1_ref[...], 0.0)                                      # (1, Cr)
        z = jnp.sum(w2t_ref[...] * h, axis=1, keepdims=True) + b2_ref[...]
        s = pl.reciprocal(1.0 + jnp.exp(-z), approx=True)            # sigmoid (EUP)
        mA = jnp.mean(s[:half, :], axis=0, keepdims=True)            # (1, 1)
        mB = jnp.mean(s[half:, :], axis=0, keepdims=True)            # (1, 1)
        cidx = lax.broadcasted_iota(jnp.int32, (C, 1), 0)
        y = (s + jnp.where(cidx < half, mA, mB)) * 0.5               # (C, 1)

        xs = xn * y                                                  # (C, P)

        mask = mask_ref[...]                                         # (9, P)

        # ---- two 3x3 convs as single im2col matmuls ----
        # Taps are streamed into the shared bf16 patch scratch (one live tap
        # at a time); precomputed masks replace the iota/compare/select work.
        def conv3x3(src, w_ref, b_ref):
            for k, (dy, dx) in enumerate(offs):
                sft = dy * W + dx
                t = src if sft == 0 else pltpu.roll(src, (-sft) % P, 1)
                if sft != 0:
                    t = t * mask[k:k + 1, :]
                patch_ref[pl.ds(k * C, C), :] = t.astype(patch_ref.dtype)
            out = jnp.dot(w_ref[...], patch_ref[...],
                          preferred_element_type=jnp.float32)        # (Cout, P)
            return jnp.maximum(out + b_ref[...], 0.0)

        h1 = conv3x3(xs, cw1_ref, cb1_ref)                           # (C, P)
        h2 = conv3x3(h1, cw2_ref, cb2_ref)                           # (Co, P)
        o_ref[...] = h2[None].astype(o_ref.dtype)                    # (1, Co, P)

    out = pl.pallas_call(
        kernel,
        out_shape=jax.ShapeDtypeStruct((B, Co, P), jnp.float32),
        grid=(B,),
        in_specs=[
            pl.BlockSpec((1, Ch, P), lambda b: (b, 0, 0)),
            pl.BlockSpec((1, Ch, P), lambda b: (b, 0, 0)),
            pl.BlockSpec((C, 1), lambda b: (0, 0)),
            pl.BlockSpec((C, 1), lambda b: (0, 0)),
            pl.BlockSpec((C, Cr), lambda b: (0, 0)),
            pl.BlockSpec((1, Cr), lambda b: (0, 0)),
            pl.BlockSpec((C, Cr), lambda b: (0, 0)),
            pl.BlockSpec((C, 1), lambda b: (0, 0)),
            pl.BlockSpec((C, 9 * C), lambda b: (0, 0)),
            pl.BlockSpec((C, 1), lambda b: (0, 0)),
            pl.BlockSpec((Co, 9 * C), lambda b: (0, 0)),
            pl.BlockSpec((Co, 1), lambda b: (0, 0)),
            pl.BlockSpec((9, P), lambda b: (0, 0)),
        ],
        out_specs=pl.BlockSpec((1, Co, P), lambda b: (b, 0, 0)),
        scratch_shapes=[
            pltpu.VMEM((C, P), jnp.float32),          # BN+ReLU result
            pltpu.VMEM((9 * C, P), jnp.bfloat16),     # shared im2col patches
        ],
        compiler_params=pltpu.CompilerParams(
            dimension_semantics=("parallel",)),
    )(x1f, x2f, bn_scale, bn_shift, w1, b1, w2t, b2,
      cw1m, cb1, cw2m, cb2, masks)

    return out.reshape(B, Co, H, W)   # already NCHW; free reshape


# -----------------------------------------------------------------------------
# Pure-JAX reference (mirrors the PyTorch forward, training-mode BN, all f32)
# -----------------------------------------------------------------------------
def maff_reference(x1, x2, p):
    x = jnp.concatenate([x1, x2], axis=1).astype(jnp.float32)   # NCHW
    mean = jnp.mean(x, axis=(0, 2, 3), keepdims=True)
    var = jnp.mean((x - mean) ** 2, axis=(0, 2, 3), keepdims=True)
    xn = (x - mean) / jnp.sqrt(var + 1e-5)
    xn = xn * p['bn_gamma'][None, :, None, None] + p['bn_beta'][None, :, None, None]
    xn = jnp.maximum(xn, 0.0)

    pooled = jnp.mean(xn, axis=(2, 3))                          # (B, C)
    h = jnp.maximum(pooled @ p['w1'] + p['b1'][None, :], 0.0)
    s = 1.0 / (1.0 + jnp.exp(-(h @ p['w2'] + p['b2'][None, :])))
    C = s.shape[1]
    half = C // 2
    y1m = jnp.mean(s[:, :half], axis=1, keepdims=True)
    y2m = jnp.mean(s[:, half:], axis=1, keepdims=True)
    means = jnp.concatenate(
        [jnp.tile(y1m, (1, half)), jnp.tile(y2m, (1, half))], axis=1)
    y = (s + means) / 2.0

    xs = xn * y[:, :, None, None]
    out = lax.conv_general_dilated(
        xs, p['cw1'], window_strides=(1, 1), padding='SAME',
        dimension_numbers=('NCHW', 'HWIO', 'NCHW'))
    out = jnp.maximum(out + p['cb1'][None, :, None, None], 0.0)
    out = lax.conv_general_dilated(
        out, p['cw2'], window_strides=(1, 1), padding='SAME',
        dimension_numbers=('NCHW', 'HWIO', 'NCHW'))
    out = jnp.maximum(out + p['cb2'][None, :, None, None], 0.0)
    return out


# -----------------------------------------------------------------------------
# Deterministic parameter init (shapes from MAFF.__init__, out_channel=None)
# -----------------------------------------------------------------------------
def init_params(key, channel, reduction=16, out_channel=None):
    C = channel
    Cr = C // reduction
    Co = out_channel if out_channel is not None else C // 2
    ks = jax.random.split(key, 8)
    return {
        'bn_gamma': jnp.ones((C,), jnp.float32),       # BatchNorm2d default
        'bn_beta':  jnp.zeros((C,), jnp.float32),
        # conv_du: 1x1 convs stored as (Cin, Cout) matrices
        'w1': 0.2 * jax.random.normal(ks[0], (C, Cr), jnp.float32),
        'b1': 0.1 * jax.random.normal(ks[1], (Cr,), jnp.float32),
        'w2': 0.2 * jax.random.normal(ks[2], (Cr, C), jnp.float32),
        'b2': 0.1 * jax.random.normal(ks[3], (C,), jnp.float32),
        # conv_layers: 3x3 convs stored HWIO
        'cw1': 0.1 * jax.random.normal(ks[4], (3, 3, C, C), jnp.float32),
        'cb1': 0.05 * jax.random.normal(ks[5], (C,), jnp.float32),
        'cw2': 0.1 * jax.random.normal(ks[6], (3, 3, C, Co), jnp.float32),
        'cb2': 0.05 * jax.random.normal(ks[7], (Co,), jnp.float32),
    }


if __name__ == "__main__":
    key = jax.random.PRNGKey(0)
    k1, k2, kp = jax.random.split(key, 3)
    B, C, H, W = 2, 32, 16, 16          # channel=32, reduction=16 -> C//r = 2
    x1 = jax.random.normal(k1, (B, C // 2, H, W), jnp.float32)
    x2 = jax.random.normal(k2, (B, C // 2, H, W), jnp.float32)
    params = init_params(kp, C, reduction=16, out_channel=None)

    out = maff_forward_pallas(x1, x2, params)
    out = jax.block_until_ready(out)

    ref = jax.block_until_ready(maff_reference(x1, x2, params))
    assert out.shape == ref.shape == (B, C // 2, H, W), (out.shape, ref.shape)
    max_err = float(jnp.max(jnp.abs(out - ref)))
    # Tolerance widened vs the pure-f32 v1 because the im2col matmuls now use
    # bf16 operands (f32 accumulation) per the performance review.
    if max_err > 5e-2:
        raise AssertionError(f"mismatch vs reference: max_err={max_err}")

    print("KERNEL_OK")
</pallas_src>

<mosaic_0001>
module attributes {stable_mosaic.version = 11 : i64} {
  func.func @kernel(%arg0: i32, %arg1: memref<1x16x256xf32, #tpu.memory_space<vmem>>, %arg2: memref<1x16x256xf32, #tpu.memory_space<vmem>>, %arg3: memref<32x1xf32, #tpu.memory_space<vmem>>, %arg4: memref<32x1xf32, #tpu.memory_space<vmem>>, %arg5: memref<32x2xf32, #tpu.memory_space<vmem>>, %arg6: memref<1x2xf32, #tpu.memory_space<vmem>>, %arg7: memref<32x2xf32, #tpu.memory_space<vmem>>, %arg8: memref<32x1xf32, #tpu.memory_space<vmem>>, %arg9: memref<32x288xbf16, #tpu.memory_space<vmem>>, %arg10: memref<32x1xf32, #tpu.memory_space<vmem>>, %arg11: memref<16x288xbf16, #tpu.memory_space<vmem>>, %arg12: memref<16x1xf32, #tpu.memory_space<vmem>>, %arg13: memref<9x256xf32, #tpu.memory_space<vmem>>, %arg14: memref<1x16x256xf32, #tpu.memory_space<vmem>>, %arg15: memref<32x256xf32, #tpu.memory_space<vmem>>, %arg16: memref<288x256xbf16, #tpu.memory_space<vmem>>) attributes {dimension_semantics = [#tpu.dimension_semantics<parallel>], iteration_bounds = array<i64: 2>, scalar_prefetch = 0 : i64, scratch_operands = 2 : i64, tpu.core_type = #tpu.core_type<tc>, window_params = [{transform_indices = @transform_0, window_bounds = array<i64: 1, 16, 256>}, {transform_indices = @transform_1, window_bounds = array<i64: 1, 16, 256>}, {pipeline_mode = #tpu.pipeline_mode<synchronous>, transform_indices = @transform_2, window_bounds = array<i64: 32, 1>}, {pipeline_mode = #tpu.pipeline_mode<synchronous>, transform_indices = @transform_3, window_bounds = array<i64: 32, 1>}, {pipeline_mode = #tpu.pipeline_mode<synchronous>, transform_indices = @transform_4, window_bounds = array<i64: 32, 2>}, {pipeline_mode = #tpu.pipeline_mode<synchronous>, transform_indices = @transform_5, window_bounds = array<i64: 1, 2>}, {pipeline_mode = #tpu.pipeline_mode<synchronous>, transform_indices = @transform_6, window_bounds = array<i64: 32, 2>}, {pipeline_mode = #tpu.pipeline_mode<synchronous>, transform_indices = @transform_7, window_bounds = array<i64: 32, 1>}, {pipeline_mode = #tpu.pipeline_mode<synchronous>, transform_indices = @transform_8, window_bounds = array<i64: 32, 288>}, {pipeline_mode = #tpu.pipeline_mode<synchronous>, transform_indices = @transform_9, window_bounds = array<i64: 32, 1>}, {pipeline_mode = #tpu.pipeline_mode<synchronous>, transform_indices = @transform_10, window_bounds = array<i64: 16, 288>}, {pipeline_mode = #tpu.pipeline_mode<synchronous>, transform_indices = @transform_11, window_bounds = array<i64: 16, 1>}, {pipeline_mode = #tpu.pipeline_mode<synchronous>, transform_indices = @transform_12, window_bounds = array<i64: 9, 256>}, {transform_indices = @transform_13, window_bounds = array<i64: 1, 16, 256>}]} {
    %c0 = arith.constant 0 : index
    %c0_0 = arith.constant 0 : index
    %0 = vector.load %arg3[%c0, %c0_0] : memref<32x1xf32, #tpu.memory_space<vmem>>, vector<32x1xf32>
    %c0_1 = arith.constant 0 : index
    %c0_2 = arith.constant 0 : index
    %1 = vector.load %arg4[%c0_1, %c0_2] : memref<32x1xf32, #tpu.memory_space<vmem>>, vector<32x1xf32>
    %c0_3 = arith.constant 0 : index
    %c0_4 = arith.constant 0 : index
    %c0_5 = arith.constant 0 : index
    %2 = vector.load %arg1[%c0_3, %c0_4, %c0_5] : memref<1x16x256xf32, #tpu.memory_space<vmem>>, vector<1x16x256xf32>
    %3 = vector.shape_cast %2 : vector<1x16x256xf32> to vector<16x256xf32>
    %4 = vector.extract_strided_slice %0 {offsets = [0, 0], sizes = [16, 1], strides = [1, 1]} : vector<32x1xf32> to vector<16x1xf32>
    %5 = vector.broadcast %4 : vector<16x1xf32> to vector<16x256xf32>
    %6 = arith.mulf %3, %5 : vector<16x256xf32>
    %7 = vector.extract_strided_slice %1 {offsets = [0, 0], sizes = [16, 1], strides = [1, 1]} : vector<32x1xf32> to vector<16x1xf32>
    %8 = vector.broadcast %7 : vector<16x1xf32> to vector<16x256xf32>
    %9 = arith.addf %6, %8 : vector<16x256xf32>
    %cst = arith.constant 0.000000e+00 : f32
    %10 = vector.broadcast %cst : f32 to vector<16x256xf32>
    %11 = arith.maximumf %9, %10 : vector<16x256xf32>
    %c0_6 = arith.constant 0 : index
    %c0_7 = arith.constant 0 : index
    %12 = vector.load %arg15[%c0_6, %c0_7] : memref<32x256xf32, #tpu.memory_space<vmem>>, vector<16x256xf32>
    tpu.vector_store %arg15[%c0_6, %c0_7], %11 {strides = array<i32>} : memref<32x256xf32, #tpu.memory_space<vmem>>, vector<16x256xf32>,
    %c0_8 = arith.constant 0 : index
    %c0_9 = arith.constant 0 : index
    %c0_10 = arith.constant 0 : index
    %13 = vector.load %arg2[%c0_8, %c0_9, %c0_10] : memref<1x16x256xf32, #tpu.memory_space<vmem>>, vector<1x16x256xf32>
    %14 = vector.shape_cast %13 : vector<1x16x256xf32> to vector<16x256xf32>
    %15 = vector.extract_strided_slice %0 {offsets = [16, 0], sizes = [16, 1], strides = [1, 1]} : vector<32x1xf32> to vector<16x1xf32>
    %16 = vector.broadcast %15 : vector<16x1xf32> to vector<16x256xf32>
    %17 = arith.mulf %14, %16 : vector<16x256xf32>
    %18 = vector.extract_strided_slice %1 {offsets = [16, 0], sizes = [16, 1], strides = [1, 1]} : vector<32x1xf32> to vector<16x1xf32>
    %19 = vector.broadcast %18 : vector<16x1xf32> to vector<16x256xf32>
    %20 = arith.addf %17, %19 : vector<16x256xf32>
    %cst_11 = arith.constant 0.000000e+00 : f32
    %21 = vector.broadcast %cst_11 : f32 to vector<16x256xf32>
    %22 = arith.maximumf %20, %21 : vector<16x256xf32>
    %c16 = arith.constant 16 : index
    %c0_12 = arith.constant 0 : index
    %23 = vector.load %arg15[%c16, %c0_12] : memref<32x256xf32, #tpu.memory_space<vmem>>, vector<16x256xf32>
    tpu.vector_store %arg15[%c16, %c0_12], %22 {strides = array<i32>} : memref<32x256xf32, #tpu.memory_space<vmem>>, vector<16x256xf32>,
    %c0_13 = arith.constant 0 : index
    %c0_14 = arith.constant 0 : index
    %24 = vector.load %arg15[%c0_13, %c0_14] : memref<32x256xf32, #tpu.memory_space<vmem>>, vector<32x256xf32>
    %cst_15 = arith.constant dense<0.000000e+00> : vector<32xf32>
    %25 = vector.multi_reduction <add>, %24, %cst_15 [1] : vector<32x256xf32> to vector<32xf32>
    %26 = vector.shape_cast %25 : vector<32xf32> to vector<32x1xf32>
    %cst_16 = arith.constant 2.560000e+02 : f32
    %27 = vector.broadcast %cst_16 : f32 to vector<32x1xf32>
    %28 = arith.divf %26, %27 : vector<32x1xf32>
    %c0_17 = arith.constant 0 : index
    %c0_18 = arith.constant 0 : index
    %29 = vector.load %arg5[%c0_17, %c0_18] : memref<32x2xf32, #tpu.memory_space<vmem>>, vector<32x2xf32>
    %30 = vector.broadcast %28 : vector<32x1xf32> to vector<32x2xf32>
    %31 = arith.mulf %30, %29 : vector<32x2xf32>
    %cst_19 = arith.constant dense<0.000000e+00> : vector<2xf32>
    %32 = vector.multi_reduction <add>, %31, %cst_19 [0] : vector<32x2xf32> to vector<2xf32>
    %33 = vector.shape_cast %32 : vector<2xf32> to vector<1x2xf32>
    %c0_20 = arith.constant 0 : index
    %c0_21 = arith.constant 0 : index
    %34 = vector.load %arg6[%c0_20, %c0_21] : memref<1x2xf32, #tpu.memory_space<vmem>>, vector<1x2xf32>
    %35 = arith.addf %33, %34 : vector<1x2xf32>
    %cst_22 = arith.constant 0.000000e+00 : f32
    %36 = vector.broadcast %cst_22 : f32 to vector<1x2xf32>
    %37 = arith.maximumf %35, %36 : vector<1x2xf32>
    %c0_23 = arith.constant 0 : index
    %c0_24 = arith.constant 0 : index
    %38 = vector.load %arg7[%c0_23, %c0_24] : memref<32x2xf32, #tpu.memory_space<vmem>>, vector<32x2xf32>
    %39 = vector.broadcast %37 : vector<1x2xf32> to vector<32x2xf32>
    %40 = arith.mulf %38, %39 : vector<32x2xf32>
    %cst_25 = arith.constant dense<0.000000e+00> : vector<32xf32>
    %41 = vector.multi_reduction <add>, %40, %cst_25 [1] : vector<32x2xf32> to vector<32xf32>
    %42 = vector.shape_cast %41 : vector<32xf32> to vector<32x1xf32>
    %c0_26 = arith.constant 0 : index
    %c0_27 = arith.constant 0 : index
    %43 = vector.load %arg8[%c0_26, %c0_27] : memref<32x1xf32, #tpu.memory_space<vmem>>, vector<32x1xf32>
    %44 = arith.addf %42, %43 : vector<32x1xf32>
    %cst_28 = arith.constant 0.000000e+00 : f32
    %45 = vector.broadcast %cst_28 : f32 to vector<32x1xf32>
    %46 = arith.subf %45, %44 : vector<32x1xf32>
    %47 = math.exp %46 : vector<32x1xf32>
    %cst_29 = arith.constant 1.000000e+00 : f32
    %48 = vector.broadcast %cst_29 : f32 to vector<32x1xf32>
    %49 = arith.addf %48, %47 : vector<32x1xf32>
    %50 = tpu.reciprocal %49 {approx = true} : vector<32x1xf32> -> vector<32x1xf32>
    %51 = vector.extract_strided_slice %50 {offsets = [0, 0], sizes = [16, 1], strides = [1, 1]} : vector<32x1xf32> to vector<16x1xf32>
    %cst_30 = arith.constant dense<0.000000e+00> : vector<1xf32>
    %52 = vector.multi_reduction <add>, %51, %cst_30 [0] : vector<16x1xf32> to vector<1xf32>
    %53 = vector.shape_cast %52 : vector<1xf32> to vector<1x1xf32>
    %cst_31 = arith.constant 1.600000e+01 : f32
    %54 = vector.broadcast %cst_31 : f32 to vector<1x1xf32>
    %55 = arith.divf %53, %54 : vector<1x1xf32>
    %56 = vector.extract_strided_slice %50 {offsets = [16, 0], sizes = [16, 1], strides = [1, 1]} : vector<32x1xf32> to vector<16x1xf32>
    %cst_32 = arith.constant dense<0.000000e+00> : vector<1xf32>
    %57 = vector.multi_reduction <add>, %56, %cst_32 [0] : vector<16x1xf32> to vector<1xf32>
    %58 = vector.shape_cast %57 : vector<1xf32> to vector<1x1xf32>
    %cst_33 = arith.constant 1.600000e+01 : f32
    %59 = vector.broadcast %cst_33 : f32 to vector<1x1xf32>
    %60 = arith.divf %58, %59 : vector<1x1xf32>
    %61 = tpu.iota {dimensions = array<i32: 0>} : vector<32x1xi32>
    %c16_i32 = arith.constant 16 : i32
    %62 = vector.broadcast %c16_i32 : i32 to vector<32x1xi32>
    %63 = arith.cmpi slt, %61, %62 : vector<32x1xi32>
    %64 = vector.shape_cast %55 : vector<1x1xf32> to vector<1x1xf32>
    %65 = vector.broadcast %64 : vector<1x1xf32> to vector<32x1xf32>
    %66 = vector.shape_cast %60 : vector<1x1xf32> to vector<1x1xf32>
    %67 = vector.broadcast %66 : vector<1x1xf32> to vector<32x1xf32>
    %68 = arith.select %63, %65, %67 : vector<32x1xi1>, vector<32x1xf32>
    %69 = arith.addf %50, %68 : vector<32x1xf32>
    %cst_34 = arith.constant 5.000000e-01 : f32
    %70 = vector.broadcast %cst_34 : f32 to vector<32x1xf32>
    %71 = arith.mulf %69, %70 : vector<32x1xf32>
    %72 = vector.broadcast %71 : vector<32x1xf32> to vector<32x256xf32>
    %73 = arith.mulf %24, %72 : vector<32x256xf32>
    %c0_35 = arith.constant 0 : index
    %c0_36 = arith.constant 0 : index
    %74 = vector.load %arg13[%c0_35, %c0_36] : memref<9x256xf32, #tpu.memory_space<vmem>>, vector<9x256xf32>
    %c17_i32 = arith.constant 17 : i32
    %75 = tpu.dynamic_rotate %73 by %c17_i32 dim 1 : vector<32x256xf32>, i32 -> vector<32x256xf32>
    %76 = vector.extract_strided_slice %74 {offsets = [0, 0], sizes = [1, 256], strides = [1, 1]} : vector<9x256xf32> to vector<1x256xf32>
    %77 = vector.broadcast %76 : vector<1x256xf32> to vector<32x256xf32>
    %78 = arith.mulf %75, %77 : vector<32x256xf32>
    %79 = arith.truncf %78 : vector<32x256xf32> to vector<32x256xbf16>
    %c0_37 = arith.constant 0 : index
    %c0_38 = arith.constant 0 : index
    %80 = vector.load %arg16[%c0_37, %c0_38] : memref<288x256xbf16, #tpu.memory_space<vmem>>, vector<32x256xbf16>
    tpu.vector_store %arg16[%c0_37, %c0_38], %79 {strides = array<i32>} : memref<288x256xbf16, #tpu.memory_space<vmem>>, vector<32x256xbf16>,
    %c16_i32_39 = arith.constant 16 : i32
    %81 = tpu.dynamic_rotate %73 by %c16_i32_39 dim 1 : vector<32x256xf32>, i32 -> vector<32x256xf32>
    %82 = vector.extract_strided_slice %74 {offsets = [1, 0], sizes = [1, 256], strides = [1, 1]} : vector<9x256xf32> to vector<1x256xf32>
    %83 = vector.broadcast %82 : vector<1x256xf32> to vector<32x256xf32>
    %84 = arith.mulf %81, %83 : vector<32x256xf32>
    %85 = arith.truncf %84 : vector<32x256xf32> to vector<32x256xbf16>
    %c32 = arith.constant 32 : index
    %c0_40 = arith.constant 0 : index
    %86 = vector.load %arg16[%c32, %c0_40] : memref<288x256xbf16, #tpu.memory_space<vmem>>, vector<32x256xbf16>
    tpu.vector_store %arg16[%c32, %c0_40], %85 {strides = array<i32>} : memref<288x256xbf16, #tpu.memory_space<vmem>>, vector<32x256xbf16>,
    %c15_i32 = arith.constant 15 : i32
    %87 = tpu.dynamic_rotate %73 by %c15_i32 dim 1 : vector<32x256xf32>, i32 -> vector<32x256xf32>
    %88 = vector.extract_strided_slice %74 {offsets = [2, 0], sizes = [1, 256], strides = [1, 1]} : vector<9x256xf32> to vector<1x256xf32>
    %89 = vector.broadcast %88 : vector<1x256xf32> to vector<32x256xf32>
    %90 = arith.mulf %87, %89 : vector<32x256xf32>
    %91 = arith.truncf %90 : vector<32x256xf32> to vector<32x256xbf16>
    %c64 = arith.constant 64 : index
    %c0_41 = arith.constant 0 : index
    %92 = vector.load %arg16[%c64, %c0_41] : memref<288x256xbf16, #tpu.memory_space<vmem>>, vector<32x256xbf16>
    tpu.vector_store %arg16[%c64, %c0_41], %91 {strides = array<i32>} : memref<288x256xbf16, #tpu.memory_space<vmem>>, vector<32x256xbf16>,
    %c1_i32 = arith.constant 1 : i32
    %93 = tpu.dynamic_rotate %73 by %c1_i32 dim 1 : vector<32x256xf32>, i32 -> vector<32x256xf32>
    %94 = vector.extract_strided_slice %74 {offsets = [3, 0], sizes = [1, 256], strides = [1, 1]} : vector<9x256xf32> to vector<1x256xf32>
    %95 = vector.broadcast %94 : vector<1x256xf32> to vector<32x256xf32>
    %96 = arith.mulf %93, %95 : vector<32x256xf32>
    %97 = arith.truncf %96 : vector<32x256xf32> to vector<32x256xbf16>
    %c96 = arith.constant 96 : index
    %c0_42 = arith.constant 0 : index
    %98 = vector.load %arg16[%c96, %c0_42] : memref<288x256xbf16, #tpu.memory_space<vmem>>, vector<32x256xbf16>
    tpu.vector_store %arg16[%c96, %c0_42], %97 {strides = array<i32>} : memref<288x256xbf16, #tpu.memory_space<vmem>>, vector<32x256xbf16>,
    %99 = arith.truncf %73 : vector<32x256xf32> to vector<32x256xbf16>
    %c128 = arith.constant 128 : index
    %c0_43 = arith.constant 0 : index
    %100 = vector.load %arg16[%c128, %c0_43] : memref<288x256xbf16, #tpu.memory_space<vmem>>, vector<32x256xbf16>
    tpu.vector_store %arg16[%c128, %c0_43], %99 {strides = array<i32>} : memref<288x256xbf16, #tpu.memory_space<vmem>>, vector<32x256xbf16>,
    %c255_i32 = arith.constant 255 : i32
    %101 = tpu.dynamic_rotate %73 by %c255_i32 dim 1 : vector<32x256xf32>, i32 -> vector<32x256xf32>
    %102 = vector.extract_strided_slice %74 {offsets = [5, 0], sizes = [1, 256], strides = [1, 1]} : vector<9x256xf32> to vector<1x256xf32>
    %103 = vector.broadcast %102 : vector<1x256xf32> to vector<32x256xf32>
    %104 = arith.mulf %101, %103 : vector<32x256xf32>
    %105 = arith.truncf %104 : vector<32x256xf32> to vector<32x256xbf16>
    %c160 = arith.constant 160 : index
    %c0_44 = arith.constant 0 : index
    %106 = vector.load %arg16[%c160, %c0_44] : memref<288x256xbf16, #tpu.memory_space<vmem>>, vector<32x256xbf16>
    tpu.vector_store %arg16[%c160, %c0_44], %105 {strides = array<i32>} : memref<288x256xbf16, #tpu.memory_space<vmem>>, vector<32x256xbf16>,
    %c241_i32 = arith.constant 241 : i32
    %107 = tpu.dynamic_rotate %73 by %c241_i32 dim 1 : vector<32x256xf32>, i32 -> vector<32x256xf32>
    %108 = vector.extract_strided_slice %74 {offsets = [6, 0], sizes = [1, 256], strides = [1, 1]} : vector<9x256xf32> to vector<1x256xf32>
    %109 = vector.broadcast %108 : vector<1x256xf32> to vector<32x256xf32>
    %110 = arith.mulf %107, %109 : vector<32x256xf32>
    %111 = arith.truncf %110 : vector<32x256xf32> to vector<32x256xbf16>
    %c192 = arith.constant 192 : index
    %c0_45 = arith.constant 0 : index
    %112 = vector.load %arg16[%c192, %c0_45] : memref<288x256xbf16, #tpu.memory_space<vmem>>, vector<32x256xbf16>
    tpu.vector_store %arg16[%c192, %c0_45], %111 {strides = array<i32>} : memref<288x256xbf16, #tpu.memory_space<vmem>>, vector<32x256xbf16>,
    %c240_i32 = arith.constant 240 : i32
    %113 = tpu.dynamic_rotate %73 by %c240_i32 dim 1 : vector<32x256xf32>, i32 -> vector<32x256xf32>
    %114 = vector.extract_strided_slice %74 {offsets = [7, 0], sizes = [1, 256], strides = [1, 1]} : vector<9x256xf32> to vector<1x256xf32>
    %115 = vector.broadcast %114 : vector<1x256xf32> to vector<32x256xf32>
    %116 = arith.mulf %113, %115 : vector<32x256xf32>
    %117 = arith.truncf %116 : vector<32x256xf32> to vector<32x256xbf16>
    %c224 = arith.constant 224 : index
    %c0_46 = arith.constant 0 : index
    %118 = vector.load %arg16[%c224, %c0_46] : memref<288x256xbf16, #tpu.memory_space<vmem>>, vector<32x256xbf16>
    tpu.vector_store %arg16[%c224, %c0_46], %117 {strides = array<i32>} : memref<288x256xbf16, #tpu.memory_space<vmem>>, vector<32x256xbf16>,
    %c239_i32 = arith.constant 239 : i32
    %119 = tpu.dynamic_rotate %73 by %c239_i32 dim 1 : vector<32x256xf32>, i32 -> vector<32x256xf32>
    %120 = vector.extract_strided_slice %74 {offsets = [8, 0], sizes = [1, 256], strides = [1, 1]} : vector<9x256xf32> to vector<1x256xf32>
    %121 = vector.broadcast %120 : vector<1x256xf32> to vector<32x256xf32>
    %122 = arith.mulf %119, %121 : vector<32x256xf32>
    %123 = arith.truncf %122 : vector<32x256xf32> to vector<32x256xbf16>
    %c256 = arith.constant 256 : index
    %c0_47 = arith.constant 0 : index
    %124 = vector.load %arg16[%c256, %c0_47] : memref<288x256xbf16, #tpu.memory_space<vmem>>, vector<32x256xbf16>
    tpu.vector_store %arg16[%c256, %c0_47], %123 {strides = array<i32>} : memref<288x256xbf16, #tpu.memory_space<vmem>>, vector<32x256xbf16>,
    %c0_48 = arith.constant 0 : index
    %c0_49 = arith.constant 0 : index
    %125 = vector.load %arg9[%c0_48, %c0_49] : memref<32x288xbf16, #tpu.memory_space<vmem>>, vector<32x288xbf16>
    %c0_50 = arith.constant 0 : index
    %c0_51 = arith.constant 0 : index
    %126 = vector.load %arg16[%c0_50, %c0_51] : memref<288x256xbf16, #tpu.memory_space<vmem>>, vector<288x256xbf16>
    %cst_52 = arith.constant dense<0.000000e+00> : vector<32x256xf32>
    %127 = tpu.matmul %125, %126, %cst_52 {dimension_numbers = #tpu.dot_dimension_numbers<[1], [0], [0], [1], [0, 0, 1, 1], [], []>} : vector<32x288xbf16>, vector<288x256xbf16>, vector<32x256xf32> -> vector<32x256xf32>
    %c0_53 = arith.constant 0 : index
    %c0_54 = arith.constant 0 : index
    %128 = vector.load %arg10[%c0_53, %c0_54] : memref<32x1xf32, #tpu.memory_space<vmem>>, vector<32x1xf32>
    %129 = vector.broadcast %128 : vector<32x1xf32> to vector<32x256xf32>
    %130 = arith.addf %127, %129 : vector<32x256xf32>
    %cst_55 = arith.constant 0.000000e+00 : f32
    %131 = vector.broadcast %cst_55 : f32 to vector<32x256xf32>
    %132 = arith.maximumf %130, %131 : vector<32x256xf32>
    %c17_i32_56 = arith.constant 17 : i32
    %133 = tpu.dynamic_rotate %132 by %c17_i32_56 dim 1 : vector<32x256xf32>, i32 -> vector<32x256xf32>
    %134 = vector.extract_strided_slice %74 {offsets = [0, 0], sizes = [1, 256], strides = [1, 1]} : vector<9x256xf32> to vector<1x256xf32>
    %135 = vector.broadcast %134 : vector<1x256xf32> to vector<32x256xf32>
    %136 = arith.mulf %133, %135 : vector<32x256xf32>
    %137 = arith.truncf %136 : vector<32x256xf32> to vector<32x256xbf16>
    %c0_57 = arith.constant 0 : index
    %c0_58 = arith.constant 0 : index
    %138 = vector.load %arg16[%c0_57, %c0_58] : memref<288x256xbf16, #tpu.memory_space<vmem>>, vector<32x256xbf16>
    tpu.vector_store %arg16[%c0_57, %c0_58], %137 {strides = array<i32>} : memref<288x256xbf16, #tpu.memory_space<vmem>>, vector<32x256xbf16>,
    %c16_i32_59 = arith.constant 16 : i32
    %139 = tpu.dynamic_rotate %132 by %c16_i32_59 dim 1 : vector<32x256xf32>, i32 -> vector<32x256xf32>
    %140 = vector.extract_strided_slice %74 {offsets = [1, 0], sizes = [1, 256], strides = [1, 1]} : vector<9x256xf32> to vector<1x256xf32>
    %141 = vector.broadcast %140 : vector<1x256xf32> to vector<32x256xf32>
    %142 = arith.mulf %139, %141 : vector<32x256xf32>
    %143 = arith.truncf %142 : vector<32x256xf32> to vector<32x256xbf16>
    %c32_60 = arith.constant 32 : index
    %c0_61 = arith.constant 0 : index
    %144 = vector.load %arg16[%c32_60, %c0_61] : memref<288x256xbf16, #tpu.memory_space<vmem>>, vector<32x256xbf16>
    tpu.vector_store %arg16[%c32_60, %c0_61], %143 {strides = array<i32>} : memref<288x256xbf16, #tpu.memory_space<vmem>>, vector<32x256xbf16>,
    %c15_i32_62 = arith.constant 15 : i32
    %145 = tpu.dynamic_rotate %132 by %c15_i32_62 dim 1 : vector<32x256xf32>, i32 -> vector<32x256xf32>
    %146 = vector.extract_strided_slice %74 {offsets = [2, 0], sizes = [1, 256], strides = [1, 1]} : vector<9x256xf32> to vector<1x256xf32>
    %147 = vector.broadcast %146 : vector<1x256xf32> to vector<32x256xf32>
    %148 = arith.mulf %145, %147 : vector<32x256xf32>
    %149 = arith.truncf %148 : vector<32x256xf32> to vector<32x256xbf16>
    %c64_63 = arith.constant 64 : index
    %c0_64 = arith.constant 0 : index
    %150 = vector.load %arg16[%c64_63, %c0_64] : memref<288x256xbf16, #tpu.memory_space<vmem>>, vector<32x256xbf16>
    tpu.vector_store %arg16[%c64_63, %c0_64], %149 {strides = array<i32>} : memref<288x256xbf16, #tpu.memory_space<vmem>>, vector<32x256xbf16>,
    %c1_i32_65 = arith.constant 1 : i32
    %151 = tpu.dynamic_rotate %132 by %c1_i32_65 dim 1 : vector<32x256xf32>, i32 -> vector<32x256xf32>
    %152 = vector.extract_strided_slice %74 {offsets = [3, 0], sizes = [1, 256], strides = [1, 1]} : vector<9x256xf32> to vector<1x256xf32>
    %153 = vector.broadcast %152 : vector<1x256xf32> to vector<32x256xf32>
    %154 = arith.mulf %151, %153 : vector<32x256xf32>
    %155 = arith.truncf %154 : vector<32x256xf32> to vector<32x256xbf16>
    %c96_66 = arith.constant 96 : index
    %c0_67 = arith.constant 0 : index
    %156 = vector.load %arg16[%c96_66, %c0_67] : memref<288x256xbf16, #tpu.memory_space<vmem>>, vector<32x256xbf16>
    tpu.vector_store %arg16[%c96_66, %c0_67], %155 {strides = array<i32>} : memref<288x256xbf16, #tpu.memory_space<vmem>>, vector<32x256xbf16>,
    %157 = arith.truncf %132 : vector<32x256xf32> to vector<32x256xbf16>
    %c128_68 = arith.constant 128 : index
    %c0_69 = arith.constant 0 : index
    %158 = vector.load %arg16[%c128_68, %c0_69] : memref<288x256xbf16, #tpu.memory_space<vmem>>, vector<32x256xbf16>
    tpu.vector_store %arg16[%c128_68, %c0_69], %157 {strides = array<i32>} : memref<288x256xbf16, #tpu.memory_space<vmem>>, vector<32x256xbf16>,
    %c255_i32_70 = arith.constant 255 : i32
    %159 = tpu.dynamic_rotate %132 by %c255_i32_70 dim 1 : vector<32x256xf32>, i32 -> vector<32x256xf32>
    %160 = vector.extract_strided_slice %74 {offsets = [5, 0], sizes = [1, 256], strides = [1, 1]} : vector<9x256xf32> to vector<1x256xf32>
    %161 = vector.broadcast %160 : vector<1x256xf32> to vector<32x256xf32>
    %162 = arith.mulf %159, %161 : vector<32x256xf32>
    %163 = arith.truncf %162 : vector<32x256xf32> to vector<32x256xbf16>
    %c160_71 = arith.constant 160 : index
    %c0_72 = arith.constant 0 : index
    %164 = vector.load %arg16[%c160_71, %c0_72] : memref<288x256xbf16, #tpu.memory_space<vmem>>, vector<32x256xbf16>
    tpu.vector_store %arg16[%c160_71, %c0_72], %163 {strides = array<i32>} : memref<288x256xbf16, #tpu.memory_space<vmem>>, vector<32x256xbf16>,
    %c241_i32_73 = arith.constant 241 : i32
    %165 = tpu.dynamic_rotate %132 by %c241_i32_73 dim 1 : vector<32x256xf32>, i32 -> vector<32x256xf32>
    %166 = vector.extract_strided_slice %74 {offsets = [6, 0], sizes = [1, 256], strides = [1, 1]} : vector<9x256xf32> to vector<1x256xf32>
    %167 = vector.broadcast %166 : vector<1x256xf32> to vector<32x256xf32>
    %168 = arith.mulf %165, %167 : vector<32x256xf32>
    %169 = arith.truncf %168 : vector<32x256xf32> to vector<32x256xbf16>
    %c192_74 = arith.constant 192 : index
    %c0_75 = arith.constant 0 : index
    %170 = vector.load %arg16[%c192_74, %c0_75] : memref<288x256xbf16, #tpu.memory_space<vmem>>, vector<32x256xbf16>
    tpu.vector_store %arg16[%c192_74, %c0_75], %169 {strides = array<i32>} : memref<288x256xbf16, #tpu.memory_space<vmem>>, vector<32x256xbf16>,
    %c240_i32_76 = arith.constant 240 : i32
    %171 = tpu.dynamic_rotate %132 by %c240_i32_76 dim 1 : vector<32x256xf32>, i32 -> vector<32x256xf32>
    %172 = vector.extract_strided_slice %74 {offsets = [7, 0], sizes = [1, 256], strides = [1, 1]} : vector<9x256xf32> to vector<1x256xf32>
    %173 = vector.broadcast %172 : vector<1x256xf32> to vector<32x256xf32>
    %174 = arith.mulf %171, %173 : vector<32x256xf32>
    %175 = arith.truncf %174 : vector<32x256xf32> to vector<32x256xbf16>
    %c224_77 = arith.constant 224 : index
    %c0_78 = arith.constant 0 : index
    %176 = vector.load %arg16[%c224_77, %c0_78] : memref<288x256xbf16, #tpu.memory_space<vmem>>, vector<32x256xbf16>
    tpu.vector_store %arg16[%c224_77, %c0_78], %175 {strides = array<i32>} : memref<288x256xbf16, #tpu.memory_space<vmem>>, vector<32x256xbf16>,
    %c239_i32_79 = arith.constant 239 : i32
    %177 = tpu.dynamic_rotate %132 by %c239_i32_79 dim 1 : vector<32x256xf32>, i32 -> vector<32x256xf32>
    %178 = vector.extract_strided_slice %74 {offsets = [8, 0], sizes = [1, 256], strides = [1, 1]} : vector<9x256xf32> to vector<1x256xf32>
    %179 = vector.broadcast %178 : vector<1x256xf32> to vector<32x256xf32>
    %180 = arith.mulf %177, %179 : vector<32x256xf32>
    %181 = arith.truncf %180 : vector<32x256xf32> to vector<32x256xbf16>
    %c256_80 = arith.constant 256 : index
    %c0_81 = arith.constant 0 : index
    %182 = vector.load %arg16[%c256_80, %c0_81] : memref<288x256xbf16, #tpu.memory_space<vmem>>, vector<32x256xbf16>
    tpu.vector_store %arg16[%c256_80, %c0_81], %181 {strides = array<i32>} : memref<288x256xbf16, #tpu.memory_space<vmem>>, vector<32x256xbf16>,
    %c0_82 = arith.constant 0 : index
    %c0_83 = arith.constant 0 : index
    %183 = vector.load %arg11[%c0_82, %c0_83] : memref<16x288xbf16, #tpu.memory_space<vmem>>, vector<16x288xbf16>
    %c0_84 = arith.constant 0 : index
    %c0_85 = arith.constant 0 : index
    %184 = vector.load %arg16[%c0_84, %c0_85] : memref<288x256xbf16, #tpu.memory_space<vmem>>, vector<288x256xbf16>
    %cst_86 = arith.constant dense<0.000000e+00> : vector<16x256xf32>
    %185 = tpu.matmul %183, %184, %cst_86 {dimension_numbers = #tpu.dot_dimension_numbers<[1], [0], [0], [1], [0, 0, 1, 1], [], []>} : vector<16x288xbf16>, vector<288x256xbf16>, vector<16x256xf32> -> vector<16x256xf32>
    %c0_87 = arith.constant 0 : index
    %c0_88 = arith.constant 0 : index
    %186 = vector.load %arg12[%c0_87, %c0_88] : memref<16x1xf32, #tpu.memory_space<vmem>>, vector<16x1xf32>
    %187 = vector.broadcast %186 : vector<16x1xf32> to vector<16x256xf32>
    %188 = arith.addf %185, %187 : vector<16x256xf32>
    %cst_89 = arith.constant 0.000000e+00 : f32
    %189 = vector.broadcast %cst_89 : f32 to vector<16x256xf32>
    %190 = arith.maximumf %188, %189 : vector<16x256xf32>
    %191 = vector.shape_cast %190 : vector<16x256xf32> to vector<1x16x256xf32>
    %c0_90 = arith.constant 0 : index
    %c0_91 = arith.constant 0 : index
    %c0_92 = arith.constant 0 : index
    %192 = vector.load %arg14[%c0_90, %c0_91, %c0_92] : memref<1x16x256xf32, #tpu.memory_space<vmem>>, vector<1x16x256xf32>
    tpu.vector_store %arg14[%c0_90, %c0_91, %c0_92], %191 {strides = array<i32>} : memref<1x16x256xf32, #tpu.memory_space<vmem>>, vector<1x16x256xf32>,
    return
  }
  func.func @transform_0(%arg0: i32) -> (i32, i32, i32) {
    %c0_i32 = arith.constant 0 : i32
    %c0_i32_0 = arith.constant 0 : i32
    %c0_i32_1 = arith.constant 0 : i32
    return %arg0, %c0_i32, %c0_i32_0 : i32, i32, i32
  }
  func.func @transform_1(%arg0: i32) -> (i32, i32, i32) {
    %c0_i32 = arith.constant 0 : i32
    %c0_i32_0 = arith.constant 0 : i32
    %c0_i32_1 = arith.constant 0 : i32
    return %arg0, %c0_i32, %c0_i32_0 : i32, i32, i32
  }
  func.func @transform_2(%arg0: i32) -> (i32, i32) {
    %c0_i32 = arith.constant 0 : i32
    %c0_i32_0 = arith.constant 0 : i32
    %c0_i32_1 = arith.constant 0 : i32
    return %c0_i32, %c0_i32_0 : i32, i32
  }
  func.func @transform_3(%arg0: i32) -> (i32, i32) {
    %c0_i32 = arith.constant 0 : i32
    %c0_i32_0 = arith.constant 0 : i32
    %c0_i32_1 = arith.constant 0 : i32
    return %c0_i32, %c0_i32_0 : i32, i32
  }
  func.func @transform_4(%arg0: i32) -> (i32, i32) {
    %c0_i32 = arith.constant 0 : i32
    %c0_i32_0 = arith.constant 0 : i32
    %c0_i32_1 = arith.constant 0 : i32
    return %c0_i32, %c0_i32_0 : i32, i32
  }
  func.func @transform_5(%arg0: i32) -> (i32, i32) {
    %c0_i32 = arith.constant 0 : i32
    %c0_i32_0 = arith.constant 0 : i32
    %c0_i32_1 = arith.constant 0 : i32
    return %c0_i32, %c0_i32_0 : i32, i32
  }
  func.func @transform_6(%arg0: i32) -> (i32, i32) {
    %c0_i32 = arith.constant 0 : i32
    %c0_i32_0 = arith.constant 0 : i32
    %c0_i32_1 = arith.constant 0 : i32
    return %c0_i32, %c0_i32_0 : i32, i32
  }
  func.func @transform_7(%arg0: i32) -> (i32, i32) {
    %c0_i32 = arith.constant 0 : i32
    %c0_i32_0 = arith.constant 0 : i32
    %c0_i32_1 = arith.constant 0 : i32
    return %c0_i32, %c0_i32_0 : i32, i32
  }
  func.func @transform_8(%arg0: i32) -> (i32, i32) {
    %c0_i32 = arith.constant 0 : i32
    %c0_i32_0 = arith.constant 0 : i32
    %c0_i32_1 = arith.constant 0 : i32
    return %c0_i32, %c0_i32_0 : i32, i32
  }
  func.func @transform_9(%arg0: i32) -> (i32, i32) {
    %c0_i32 = arith.constant 0 : i32
    %c0_i32_0 = arith.constant 0 : i32
    %c0_i32_1 = arith.constant 0 : i32
    return %c0_i32, %c0_i32_0 : i32, i32
  }
  func.func @transform_10(%arg0: i32) -> (i32, i32) {
    %c0_i32 = arith.constant 0 : i32
    %c0_i32_0 = arith.constant 0 : i32
    %c0_i32_1 = arith.constant 0 : i32
    return %c0_i32, %c0_i32_0 : i32, i32
  }
  func.func @transform_11(%arg0: i32) -> (i32, i32) {
    %c0_i32 = arith.constant 0 : i32
    %c0_i32_0 = arith.constant 0 : i32
    %c0_i32_1 = arith.constant 0 : i32
    return %c0_i32, %c0_i32_0 : i32, i32
  }
  func.func @transform_12(%arg0: i32) -> (i32, i32) {
    %c0_i32 = arith.constant 0 : i32
    %c0_i32_0 = arith.constant 0 : i32
    %c0_i32_1 = arith.constant 0 : i32
    return %c0_i32, %c0_i32_0 : i32, i32
  }
  func.func @transform_13(%arg0: i32) -> (i32, i32, i32) {
    %c0_i32 = arith.constant 0 : i32
    %c0_i32_0 = arith.constant 0 : i32
    %c0_i32_1 = arith.constant 0 : i32
    return %arg0, %c0_i32, %c0_i32_0 : i32, i32, i32
  }
}

</mosaic_0001>

<bundles_post_ra>
// kernel: tpu_custom_call.1
= control target key start
LH: loop header
LB: loop body
LE: loop exit
PB: predicated region body
PF: predicated region fallthrough
CT: control target
= control target key end

     0   :  { %s4165_s0 = inlined_call_operand.vmem [shape: f32[2,16,256], index: 0, kind: input, shape index: {}]   ;;  %s4166_s1 = inlined_call_operand.vmem [shape: f32[2,16,256], index: 1, kind: input, shape index: {}]   ;;  %s4167_s2 = inlined_call_operand.vmem [shape: f32[32,1], index: 2, kind: input, shape index: {}]   ;;  %s4168_s3 = inlined_call_operand.vmem [shape: f32[32,1], index: 3, kind: input, shape index: {}]   ;;  %s4169_s4 = inlined_call_operand.vmem [shape: f32[32,2], index: 4, kind: input, shape index: {}]   ;;  %s4170_s5 = inlined_call_operand.vmem [shape: f32[1,2], index: 5, kind: input, shape index: {}]   ;;  %s4171_s6 = inlined_call_operand.vmem [shape: f32[32,2], index: 6, kind: input, shape index: {}]   ;;  %s4172_s7 = inlined_call_operand.vmem [shape: f32[32,1], index: 7, kind: input, shape index: {}]   ;;  %s4173_s8 = inlined_call_operand.vmem [shape: bf16[32,288], index: 8, kind: input, shape index: {}]   ;;  %s4174_s9 = inlined_call_operand.vmem [shape: f32[32,1], index: 9, kind: input, shape index: {}]   ;;  %s4175_s10 = inlined_call_operand.vmem [shape: bf16[16,288], index: 10, kind: input, shape index: {}]   ;;  %s4176_s11 = inlined_call_operand.vmem [shape: f32[16,1], index: 11, kind: input, shape index: {}]   ;;  %s4177_s12 = inlined_call_operand.hbm [shape: f32[9,256], index: 12, kind: input, shape index: {}]   ;;  %s4178_s13 = inlined_call_operand.hbm [shape: f32[2,16,256], index: 13, kind: output, shape index: {}]  }
   0x1   :  { %4189 = sst [smem:[#allocation11_spill]] %s4165_s0 }
   0x2   :  { %4190 = sst [smem:[#allocation12_spill]] %s4166_s1 }
   0x3   :  { %4191 = sst [smem:[#allocation13_spill]] %s4177_s12 }
   0x4   :  { %18 = vsyncpa [#allocation5], 0 }
   0x5   :  { %19 = vsyncpa [#allocation6], 0 }
   0x6   :  { %21 = vsyncpa [#allocation6 + $0x1], 0  ;;  %s2988_s25 = smov 0   ;;  %s2990_s26 = smov 0  }
   0x7   :  { %s2992_s27 = smov 0   ;;  %s2994_s28 = smov 0  }
   0x8 LB: > { %s3009_s29 = sadd.s32 4294967295, %s2901_s28   ;;  %s2284_s30 = sadd.s32 4294967294, %s2901_s28   ;;  %s2901_s28 = sphi %s2994_s28, %s4207_s28   ;;  %s2897_s27 = sphi %s2992_s27, %s4206_s27   ;;  %s2893_s26 = sphi %s2990_s26, %s4205_s26   ;;  %s2889_s25 = sphi %s2988_s25, %s4204_s25  }
   0x9   : > { %s3013_s14 = sadd.s32 1, %s2901_s28   ;;  %s317_s15 = sadd.s32 1, %s2897_s27 }
   0xa   : > { %s314_s16 = ssub.s32 %s2901_s28, %s3013_s14  ;;  %p327_p0 = scmp.ne.s32.totalorder %s2897_s27, %s2893_s26 }
   0xb   : > { %p315_p1 = scmp.eq.s32.totalorder %s314_s16, 0  ;;  %p328_p2 = scmp.eq.s32.totalorder %s3009_s29, 1 }
   0xc   : > { %p333_p3 = scmp.ne.s32.totalorder %s2893_s26, %s2889_s25  ;;  %p334_p4 = scmp.eq.s32.totalorder %s2284_s30, 1 }
   0xd   : > { %s3024_s17 = scalar_select %p315_p1, %s2897_s27, %s317_s15  }
   0xe   : > { %p3026_p5 = por %p328_p2, %p327_p0  ;;  %p3030_p6 = por %p334_p4, %p333_p3 }
   0xf   : > { %4192 = sst [smem:[#allocation10_spill]] %s3024_s17  ;;  %p2285_p7 = scmp.ge.s32.totalorder %s2901_s28, 1 }
  0x10   : > { %p341_p8 = scmp.lt.s32.totalorder %s2901_s28, 3  ;;  %p2728_p9 = scmp.eq.s32.totalorder %s3009_s29, 0 }
  0x11   : > { %s4195_s12 = sld [smem:[#allocation13_spill]]  ;;  %s2903_s23 = smov [#allocation4]  }
  0x12   : > { %p342_p10 = pnand %p2285_p7, %p341_p8  ;;  %s384_s24 = sshll.u32 %s2903_s23, 4  ;;  %s385_s24 = int_to_ptr.vmem [resolvable:$true] %s384_s24 }
  0x13   : > { %s2904_s30 = smov 256   ;;  %s2905_s15 = smov 16  }
  0x14   : > { %p2720_p11 = pneg %p342_p10  ;;  %416 = sbr.rel (%p342_p10) target bundleno = 1483 (0x5cb), region = 72 }
  0x16   : > { %p2721_p12 = pnand %p2728_p9, %p2720_p11 }
  0x17   : > { %s382_s22 = sshll.u32 %s4195_s12, 4  ;;  %s383_s22 = int_to_ptr.hbm [resolvable:$true] %s382_s22 }
  0x18   : > { %2723 = dma.hbm_to_vmem [thread:$0]  (!%p2721_p12), %s383_s22, 512, %s385_s24, [#allocation5], %s2904_s30, %s2904_s30, %s2905_s15  }
  0x19   : > { %2880 = dma.done.wait (%p2728_p9), [#allocation5], 512  }
  0x1a   : > { %2882 = vsyncadd (%p2728_p9), [#allocation5], 4294966784  ;;  %v2906_v0 = vmov 0   ;;  %v481_v1 = vld [vmem:[%s4168_s3] sm:$0xff]  ;;  %v479_v3 = vld [vmem:[%s4167_s2 + $0x10] sm:$0xff]  ;;  %p466_p13 = scmp.lt.s32.totalorder %s3009_s29, 1 }
  0x1b   : > { %2779 = vset.pattern.permute.xlu1 %v2906_v0  ;;  %2778 = vset.pattern.permute.xlu0 %v2906_v0  ;;  %v477_v2 = vld [vmem:[%s4167_s2] sm:$0xff]  ;;  %v482_v4 = vld [vmem:[%s4168_s3 + $0x8] sm:$0xff]  ;;  %v480_v6 = vld [vmem:[%s4167_s2 + $0x18] sm:$0xff]  ;;  %s4196_s0 = sld [smem:[#allocation11_spill]]  ;;  %v2907_v53 = vmov 256.0   ;;  %vm604_vm1 = vcmask 15360  }
  0x1c   : > { %2780 = vset.pattern.permute.xlu2 %v2906_v0  ;;  %505 = vperm.xlu1 %2779, %v481_v1   ;;  %v478_v5 = vld [vmem:[%s4167_s2 + $0x8] sm:$0xff]  ;;  %v484_v7 = vld [vmem:[%s4168_s3 + $0x18] sm:$0xff]  ;;  %v483_v8 = vld [vmem:[%s4168_s3 + $0x10] sm:$0xff]  ;;  %s467_s12 = scalar_select %p466_p13, %s3009_s29, 1  ;;  %2783 = vrcp.f32 %v2907_v53  ;;  %vm670_vm2 = vcmask 7168   ;;  %vm1383_vm11 = vcmask 261120  }
  0x1d   : > { %491 = vperm.xlu0 %2778, %v477_v2   ;;  %531 = vperm.xlu2 %2780, %v479_v3   ;;  %s4197_s1 = sld [smem:[#allocation12_spill]]  ;;  %v597_v61 = vld [vmem:[%s4169_s4 + $0x8] sm:$0xff]  ;;  %v596_v1 = vld [vmem:[%s4169_s4] sm:$0xff]  ;;  %s2910_s17 = smov 15  }
  0x1e   : > { %s2630_s30 = sshll.u32 %s467_s12, 5  ;;  %s4183_s21 = smov 16  }
  0x1f   : > { %s4181_s22 = smov 17   ;;  %s2914_s24 = smov 112  }
  0x20   : > { %s4185_s12 = smov 113   ;;  %s4200_s15 = smov 16  }
  0x21   : > { %s470_s20 = scalar_lea.vmem %s4196_s0, %s2630_s30  ;;  %s4201_s16 = smov 17  }
  0x22   : > { %v485_v9 = vld [vmem:[%s470_s20] sm:$0xff]  ;;  %v486_v10 = vld [vmem:[%s470_s20 + $0x8] sm:$0xff]  ;;  %v487_v20 = vld [vmem:[%s470_s20 + $0x10] sm:$0xff]  ;;  %v2784_v54 = vpop.eup %2783 }
  0x23   : > { %v488_v21 = vld [vmem:[%s470_s20 + $0x18] sm:$0xff]  ;;  %s475_s23 = scalar_lea.vmem %s4197_s1, %s2630_s30  ;;  %v586_v55 = vmul.f32 256.0, %v2784_v54  ;;  %vm590_vm0 = vweird.f32 %v2784_v54  ;;  %s2909_s20 = smov 1  }
  0x24   : > { %510 = vperm.xlu1 %2779, %v482_v4   ;;  %v525_v27 = vld [vmem:[%s475_s23] sm:$0xff]  ;;  %v526_v30 = vld [vmem:[%s475_s23 + $0x8] sm:$0xff]  ;;  %v527_v31 = vld [vmem:[%s475_s23 + $0x10] sm:$0xff]  ;;  %s4187_s30 = smov 127  }
  0x25   : > { %496 = vperm.xlu0 %2778, %v478_v5   ;;  %536 = vperm.xlu2 %2780, %v480_v6   ;;  %v528_v32 = vld [vmem:[%s475_s23 + $0x18] sm:$0xff]  ;;  %v587_v56 = vsub.f32 1.0, %v586_v55  ;;  %v598_v6 = vld [vmem:[%s4169_s4 + $0x10] sm:$0xff]  ;;  %s4179_s23 = smov 111  }
  0x26   : > { %v599_v4 = vld [vmem:[%s4169_s4 + $0x18] sm:$0xff] }
  0x27   : > { %v588_v57 = vmul.f32 %v2784_v54, %v587_v56 }
  0x29   : > { %v589_v58 = vadd.f32 %v2784_v54, %v588_v57  ;;  %v645_v57 = vld [vmem:[%s4172_s7 + $0x18] sm:$0xff] }
  0x2b   : > { %v591_v59 = vsel %vm590_vm0, %v2784_v54, %v589_v58  ;;  %v622_v54 = vld [vmem:[%s4171_s6 + $0x8] sm:$0xff]  ;;  %v644_v58 = vld [vmem:[%s4172_s7 + $0x10] sm:$0xff] }
  0x2c   : > { %550 = vperm.xlu1 %2779, %v484_v7  }
  0x2d   : > { %545 = vperm.xlu0 %2778, %v483_v8  }
  0x77   : > { %v532_v15 = vpop.permute.xlu2 %531 }
  0x78   : > { %v539_v36 = vmul.f32 %v532_v15, %v525_v27  ;;  %v540_v37 = vmul.f32 %v532_v15, %v526_v30  ;;  %v618_v30 = vld [vmem:[%s4170_s5] sm:$0x1] }
  0x7f   : > { %v537_v33 = vpop.permute.xlu2 %536 }
  0x80   : > { %v541_v38 = vmul.f32 %v537_v33, %v527_v31  ;;  %v542_v39 = vmul.f32 %v537_v33, %v528_v32 }
  0x8e   : > { %v506_v11 = vpop.permute.xlu1 %505 }
  0x8f   : > { %v492_v12 = vpop.permute.xlu0 %491 }
  0x90   : > { %v499_v13 = vmul.f32 %v492_v12, %v485_v9  ;;  %v500_v14 = vmul.f32 %v492_v12, %v486_v10 }
  0x92   : > { %v3075_v16 = vadd.f32 %v506_v11, %v499_v13  ;;  %v3077_v17 = vadd.f32 %v506_v11, %v500_v14 }
  0x94   : > { %v517_v18 = vmax.f32 %v3075_v16, 0.0  ;;  %v518_v19 = vmax.f32 %v3077_v17, 0.0 }
  0x96   : > { %v573_v22 = vadd.f32 %v518_v19, %v517_v18  ;;  %v511_v23 = vpop.permute.xlu1 %510 }
  0x97   : > { %v497_v24 = vpop.permute.xlu0 %496 }
  0x98   : > { %v501_v25 = vmul.f32 %v497_v24, %v487_v20  ;;  %v502_v26 = vmul.f32 %v497_v24, %v488_v21  ;;  %574 = vadd.xlane.f32.xlu2 %v573_v22 }
  0x9a   : > { %v3088_v28 = vadd.f32 %v511_v23, %v501_v25  ;;  %v3090_v29 = vadd.f32 %v511_v23, %v502_v26 }
  0x9c   : > { %v519_v34 = vmax.f32 %v3088_v28, 0.0  ;;  %v520_v35 = vmax.f32 %v3090_v29, 0.0 }
  0x9e   : > { %v576_v40 = vadd.f32 %v520_v35, %v519_v34  ;;  %v551_v41 = vpop.permute.xlu1 %550 }
  0x9f   : > { %v546_v42 = vpop.permute.xlu0 %545  ;;  %v3098_v43 = vadd.f32 %v551_v41, %v541_v38  ;;  %v3100_v44 = vadd.f32 %v551_v41, %v542_v39  ;;  %v621_v38 = vld [vmem:[%s4171_s6] sm:$0xff] }
  0xa0   : > { %v3102_v45 = vadd.f32 %v546_v42, %v539_v36  ;;  %v3104_v46 = vadd.f32 %v546_v42, %v540_v37  ;;  %577 = vadd.xlane.f32.xlu0 %v576_v40  ;;  %v624_v36 = vld [vmem:[%s4171_s6 + $0x18] sm:$0xff]  ;;  %v623_v37 = vld [vmem:[%s4171_s6 + $0x10] sm:$0xff] }
  0xa1   : > { %v559_v47 = vmax.f32 %v3098_v43, 0.0  ;;  %v560_v48 = vmax.f32 %v3100_v44, 0.0 }
  0xa2   : > { %v557_v49 = vmax.f32 %v3102_v45, 0.0  ;;  %v558_v50 = vmax.f32 %v3104_v46, 0.0 }
  0xa3   : > { %v582_v51 = vadd.f32 %v560_v48, %v559_v47 }
  0xa4   : > { %v579_v52 = vadd.f32 %v558_v50, %v557_v49 }
  0xa5   : > { %583 = vadd.xlane.f32.xlu2 %v582_v51 }
  0xa6   : > { %580 = vadd.xlane.f32.xlu1 %v579_v52 }
 0x10b   : > { %v575_v60 = vpop.xlane.xlu2 %574 }
 0x10c   : > { %v592_v63 = vmul.f32 %v591_v59, %v575_v60 }
 0x10e   : > { %v600_v3 = vmul.f32 %v596_v1, %v592_v63 }
 0x110   : > { %v605_v11 = vsel %vm604_vm1, %v600_v3, 0.0 }
 0x113   : > { %v578_v62 = vpop.xlane.xlu0 %577 }
 0x114   : > { %v593_v0 = vmul.f32 %v591_v59, %v578_v62 }
 0x116   : > { %v601_v2 = vmul.f32 %v597_v61, %v593_v0 }
 0x118   : > { %v584_v5 = vpop.xlane.xlu2 %583  ;;  %v606_v8 = vsel %vm604_vm1, %v601_v2, 0.0 }
 0x119   : > { %v581_v7 = vpop.xlane.xlu1 %580  ;;  %v595_v9 = vmul.f32 %v591_v59, %v584_v5  ;;  %v607_v14 = vadd.f32 %v606_v8, %v605_v11  ;;  %v643_v8 = vld [vmem:[%s4172_s7 + $0x8] sm:$0xff] }
 0x11a   : > { %v594_v10 = vmul.f32 %v591_v59, %v581_v7  ;;  %v642_v59 = vld [vmem:[%s4172_s7] sm:$0xff] }
 0x11b   : > { %v603_v12 = vmul.f32 %v599_v4, %v595_v9 }
 0x11c   : > { %v602_v13 = vmul.f32 %v598_v6, %v594_v10 }
 0x11d   : > { %v610_v21 = vsel %vm604_vm1, %v603_v12, 0.0  ;;  %v2908_v12 = vmov 16.0  }
 0x11e   : > { %v608_v15 = vsel %vm604_vm1, %v602_v13, 0.0 }
 0x11f   : > { %v609_v20 = vadd.f32 %v608_v15, %v607_v14 }
 0x121   : > { %v611_v22 = vadd.f32 %v610_v21, %v609_v20 }
 0x123   : > { %v612_v23 = vrot.slane %v611_v22, 4 }
 0x125   : > { %v613_v24 = vadd.f32 %v612_v23, %v611_v22 }
 0x127   : > { %v614_v25 = vrot.slane %v613_v24, 2 }
 0x129   : > { %v615_v26 = vadd.f32 %v614_v25, %v613_v24 }
 0x12b   : > { %v616_v27 = vrot.slane %v615_v26, 1 }
 0x12d   : > { %v617_v31 = vadd.f32 %v616_v27, %v615_v26 }
 0x12f   : > { %v619_v32 = vadd.f32 %v618_v30, %v617_v31 }
 0x131   : > { %v620_v33 = vmax.f32 %v619_v32, 0.0 }
 0x133   : > { %v625_v39 = vperm.slane %v620_v33, 0 }
 0x135   : > { %v629_v40 = vmul.f32 %v625_v39, %v624_v36  ;;  %v628_v41 = vmul.f32 %v625_v39, %v623_v37  ;;  %v626_v42 = vmul.f32 %v625_v39, %v621_v38  ;;  %v627_v55 = vmul.f32 %v625_v39, %v622_v54 }
 0x137   : > { %v639_v51 = vsel %vm604_vm1, %v629_v40, 0.0  ;;  %v636_v52 = vsel %vm604_vm1, %v628_v41, 0.0  ;;  %v630_v53 = vsel %vm604_vm1, %v626_v42, 0.0  ;;  %v633_v56 = vsel %vm604_vm1, %v627_v55, 0.0 }
 0x138   : > { %640 = vadd.xlane.f32.xlu0 %v639_v51  ;;  %637 = vadd.xlane.f32.xlu2 %v636_v52 }
 0x139   : > { %631 = vadd.xlane.f32.xlu1 %v630_v53 }
 0x140   : > { %634 = vadd.xlane.f32.xlu2 %v633_v56 }
 0x1ab   : > { %v641_v60 = vpop.xlane.xlu0 %640  ;;  %v638_v61 = vpop.xlane.xlu2 %637 }
 0x1ac   : > { %v649_v62 = vadd.f32 %v645_v57, %v641_v60  ;;  %v648_v63 = vadd.f32 %v644_v58, %v638_v61  ;;  %v632_v0 = vpop.xlane.xlu1 %631 }
 0x1ad   : > { %v646_v1 = vadd.f32 %v642_v59, %v632_v0 }
 0x1ae   : > { %v653_v2 = vsub.f32 0.0, %v649_v62  ;;  %v652_v3 = vsub.f32 0.0, %v648_v63 }
 0x1af   : > { %v650_v4 = vsub.f32 0.0, %v646_v1 }
 0x1b0   : > { %v660_v5 = vmul.f32 1.442695, %v653_v2  ;;  %v658_v6 = vmul.f32 1.442695, %v652_v3 }
 0x1b1   : > { %v654_v7 = vmul.f32 1.442695, %v650_v4 }
 0x1b2   : > { %2785 = vpow2.f32 %v660_v5 }
 0x1b3   : > { %2787 = vpow2.f32 %v658_v6  ;;  %v635_v9 = vpop.xlane.xlu2 %634 }
 0x1b4   : > { %2789 = vpow2.f32 %v654_v7  ;;  %v647_v10 = vadd.f32 %v643_v8, %v635_v9 }
 0x1b5   : > { %2791 = vrcp.f32 %v2908_v12 }
 0x1b6   : > { %v651_v11 = vsub.f32 0.0, %v647_v10 }
 0x1b8   : > { %v2786_v13 = vpop.eup %2785  ;;  %v656_v14 = vmul.f32 1.442695, %v651_v11 }
 0x1b9   : > { %v2788_v15 = vpop.eup %2787  ;;  %v665_v20 = vadd.f32 1.0, %v2786_v13 }
 0x1ba   : > { %v2790_v21 = vpop.eup %2789  ;;  %v664_v22 = vadd.f32 1.0, %v2788_v15  ;;  %2793 = vpow2.f32 %v656_v14 }
 0x1bb   : > { %2795 = vrcp.f32 %v665_v20  ;;  %v2792_v23 = vpop.eup %2791  ;;  %v662_v24 = vadd.f32 1.0, %v2790_v21 }
 0x1bc   : > { %2797 = vrcp.f32 %v664_v22  ;;  %v681_v25 = vmul.f32 16.0, %v2792_v23  ;;  %vm685_vm3 = vweird.f32 %v2792_v23 }
 0x1bd   : > { %2799 = vrcp.f32 %v662_v24 }
 0x1be   : > { %v682_v36 = vsub.f32 1.0, %v681_v25 }
 0x1c0   : > { %v2794_v26 = vpop.eup %2793  ;;  %v683_v40 = vmul.f32 %v2792_v23, %v682_v36 }
 0x1c1   : > { %v2796_v27 = vpop.eup %2795  ;;  %v663_v30 = vadd.f32 1.0, %v2794_v26 }
 0x1c2   : > { %v2798_v31 = vpop.eup %2797  ;;  %v689_v32 = vsel %vm670_vm2, %v2796_v27, 0.0  ;;  %v684_v55 = vadd.f32 %v2792_v23, %v683_v40 }
 0x1c3   : > { %v688_v33 = vsel %vm670_vm2, %v2798_v31, 0.0  ;;  %2801 = vrcp.f32 %v663_v30  ;;  %v2800_v39 = vpop.eup %2799 }
 0x1c4   : > { %v690_v37 = vadd.f32 %v689_v32, %v688_v33  ;;  %v671_v51 = vsel %vm670_vm2, %v2800_v39, 0.0  ;;  %v686_v59 = vsel %vm685_vm3, %v2792_v23, %v684_v55 }
 0x1c6   : > { %v691_v38 = vrot.slane %v690_v37, 4 }
 0x1c8   : > { %v692_v41 = vadd.f32 %v691_v38, %v690_v37 }
 0x1c9   : > { %v2802_v42 = vpop.eup %2801 }
 0x1ca   : > { %v672_v52 = vsel %vm670_vm2, %v2802_v42, 0.0  ;;  %v693_v53 = vrot.slane %v692_v41, 2 }
 0x1cb   : > { %v673_v54 = vadd.f32 %v672_v52, %v671_v51 }
 0x1cc   : > { %v694_v56 = vadd.f32 %v693_v53, %v692_v41 }
 0x1cd   : > { %v674_v57 = vrot.slane %v673_v54, 4 }
 0x1ce   : > { %v695_v58 = vrot.slane %v694_v56, 1 }
 0x1cf   : > { %v675_v60 = vadd.f32 %v674_v57, %v673_v54 }
 0x1d0   : > { %v696_v61 = vadd.f32 %v695_v58, %v694_v56 }
 0x1d1   : > { %v676_v62 = vrot.slane %v675_v60, 2 }
 0x1d2   : > { %v697_v63 = vmul.f32 %v696_v61, %v686_v59 }
 0x1d3   : > { %v677_v0 = vadd.f32 %v676_v62, %v675_v60 }
 0x1d4   : > { %v713_v1 = vadd.f32 %v2798_v31, %v697_v63  ;;  %v714_v2 = vadd.f32 %v2796_v27, %v697_v63 }
 0x1d5   : > { %v678_v3 = vrot.slane %v677_v0, 1 }
 0x1d6   : > { %v717_v4 = vmul.f32 0.5, %v713_v1  ;;  %v718_v5 = vmul.f32 0.5, %v714_v2 }
 0x1d7   : > { %v679_v6 = vadd.f32 %v678_v3, %v677_v0 }
 0x1d8   : > { %731 = vperm.xlu0 %2778, %v717_v4   ;;  %736 = vperm.xlu1 %2779, %v718_v5  }
 0x1d9   : > { %v687_v7 = vmul.f32 %v686_v59, %v679_v6 }
 0x1db   : > { %v712_v8 = vadd.f32 %v2802_v42, %v687_v7  ;;  %v711_v9 = vadd.f32 %v2800_v39, %v687_v7 }
 0x1dd   : > { %v716_v10 = vmul.f32 0.5, %v712_v8  ;;  %v715_v11 = vmul.f32 0.5, %v711_v9 }
 0x1df   : > { %721 = vperm.xlu2 %2780, %v715_v11  }
 0x1e0   : > { %726 = vperm.xlu0 %2778, %v716_v10  }
 0x239   : > { %v722_v12 = vpop.permute.xlu2 %721 }
 0x23a   : > { %v3171_v13 = vmul.f32 %v722_v12, %v517_v18  ;;  %v3175_v14 = vmul.f32 %v722_v12, %v518_v19 }
 0x23c   : > { %v925_v15 = vpack.c.bf16 %v3175_v14, %v3171_v13 }
 0x23e   : > { %929 = vst [vmem:[#allocation3 + $0x80] sm:$0xff] %v925_v15 }
 0x24a   : > { %v732_v20 = vpop.permute.xlu0 %731  ;;  %v737_v21 = vpop.permute.xlu1 %736 }
 0x24b   : > { %v3181_v22 = vmul.f32 %v732_v20, %v557_v49  ;;  %v3185_v23 = vmul.f32 %v732_v20, %v558_v50  ;;  %v3189_v16 = vmul.f32 %v737_v21, %v559_v47  ;;  %v3193_v17 = vmul.f32 %v737_v21, %v560_v48  ;;  %v3297_v48 = vld [vmem:[#allocation4] sm:$0xff]  ;;  %v3299_v49 = vld [vmem:[#allocation4 + $0x8] sm:$0xff] }
 0x24c   : > { %v3307_v50 = vperm.slane %v3297_v48, 3  ;;  %v3310_v24 = vperm.slane %v3299_v49, 3  ;;  %v3360_v6 = vperm.slane %v3297_v48, 2  ;;  %v3363_v7 = vperm.slane %v3299_v49, 2 }
 0x24d   : > { %886 = vrot.lane.b32.xlu1 %v3181_v22, %s2909_s20  ;;  %894 = vrot.lane.b32.xlu2 %v3185_v23, %s2909_s20  ;;  %v927_v18 = vpack.c.bf16 %v3185_v23, %v3181_v22  ;;  %v928_v19 = vpack.c.bf16 %v3193_v17, %v3189_v16 }
 0x24e   : > { %888 = vrot.lane.b32.xlu0 %v3189_v16, %s2909_s20 }
 0x24f   : > { %931 = vst [vmem:[#allocation3 + $0x90] sm:$0xff] %v927_v18 }
 0x250   : > { %932 = vst [vmem:[#allocation3 + $0x98] sm:$0xff] %v928_v19 }
 0x252   : > { %v727_v43 = vpop.permute.xlu0 %726 }
 0x253   : > { %v3207_v44 = vmul.f32 %v727_v43, %v519_v34  ;;  %v3211_v45 = vmul.f32 %v727_v43, %v520_v35  ;;  %v767_v34 = vlaneseq }
 0x255   : > { %884 = vrot.lane.b32.xlu2 %v3207_v44, %s2909_s20  ;;  %896 = vrot.lane.b32.xlu1 %v3193_v17, %s2909_s20  ;;  %v926_v46 = vpack.c.bf16 %v3211_v45, %v3207_v44  ;;  %v3295_v47 = vand.u32 127, %v767_v34 }
 0x256   : > { %882 = vrot.lane.b32.xlu0 %v3171_v13, %s2909_s20 }
 0x257   : > { %930 = vst [vmem:[#allocation3 + $0x88] sm:$0xff] %v926_v46  ;;  %vm898_vm4 = vcmp.lt.s32.totalorder %v3295_v47, 1  ;;  %vm855_vm5 = vcmp.lt.s32.totalorder %v3295_v47, 15  ;;  %vm812_vm6 = vcmp.lt.s32.totalorder %v3295_v47, 16  ;;  %vm1078_vm7 = vcmp.lt.s32.totalorder %v3295_v47, 111 }
 0x258   : > { %vm769_vm8 = vcmp.lt.s32.totalorder %v3295_v47, 17  ;;  %vm1035_vm9 = vcmp.lt.s32.totalorder %v3295_v47, 112  ;;  %vm992_vm10 = vcmp.lt.s32.totalorder %v3295_v47, 113  ;;  %vm949_vm12 = vcmp.lt.s32.totalorder %v3295_v47, 127 }
 0x25d   : > { %843 = vrot.lane.b32.xlu2 %v3181_v22, %s2910_s17  ;;  %890 = vrot.lane.b32.xlu1 %v3175_v14, %s2909_s20 }
 0x25e   : > { %892 = vrot.lane.b32.xlu0 %v3211_v45, %s2909_s20 }
 0x265   : > { %853 = vrot.lane.b32.xlu2 %v3193_v17, %s2910_s17  ;;  %845 = vrot.lane.b32.xlu1 %v3189_v16, %s2910_s17 }
 0x266   : > { %851 = vrot.lane.b32.xlu0 %v3185_v23, %s2910_s17 }
 0x26d   : > { %847 = vrot.lane.b32.xlu2 %v3175_v14, %s2910_s17  ;;  %839 = vrot.lane.b32.xlu1 %v3171_v13, %s2910_s17 }
 0x26e   : > { %841 = vrot.lane.b32.xlu0 %v3207_v44, %s2910_s17 }
 0x275   : > { %802 = vrot.lane.b32.xlu2 %v3189_v16, %s4183_s21  ;;  %849 = vrot.lane.b32.xlu1 %v3211_v45, %s2910_s17 }
 0x276   : > { %800 = vrot.lane.b32.xlu0 %v3181_v22, %s4183_s21 }
 0x27d   : > { %1066 = vrot.lane.b32.xlu2 %v3181_v22, %s4179_s23  ;;  %808 = vrot.lane.b32.xlu1 %v3185_v23, %s4183_s21 }
 0x27e   : > { %810 = vrot.lane.b32.xlu0 %v3193_v17, %s4183_s21 }
 0x285   : > { %1076 = vrot.lane.b32.xlu2 %v3193_v17, %s4179_s23  ;;  %1068 = vrot.lane.b32.xlu1 %v3189_v16, %s4179_s23 }
 0x286   : > { %1074 = vrot.lane.b32.xlu0 %v3185_v23, %s4179_s23 }
 0x28d   : > { %804 = vrot.lane.b32.xlu2 %v3175_v14, %s4183_s21  ;;  %796 = vrot.lane.b32.xlu1 %v3171_v13, %s4183_s21 }
 0x28e   : > { %798 = vrot.lane.b32.xlu0 %v3207_v44, %s4183_s21 }
 0x295   : > { %1064 = vrot.lane.b32.xlu2 %v3207_v44, %s4179_s23  ;;  %806 = vrot.lane.b32.xlu1 %v3211_v45, %s4183_s21 }
 0x296   : > { %1062 = vrot.lane.b32.xlu0 %v3171_v13, %s4179_s23 }
 0x29d   : > { %755 = vrot.lane.b32.xlu2 %v3181_v22, %s4181_s22  ;;  %1070 = vrot.lane.b32.xlu1 %v3175_v14, %s4179_s23 }
 0x29e   : > { %1072 = vrot.lane.b32.xlu0 %v3211_v45, %s4179_s23 }
 0x2a5   : > { %765 = vrot.lane.b32.xlu2 %v3193_v17, %s4181_s22  ;;  %757 = vrot.lane.b32.xlu1 %v3189_v16, %s4181_s22 }
 0x2a6   : > { %763 = vrot.lane.b32.xlu0 %v3185_v23, %s4181_s22 }
 0x2a7   : > { %v895_v28 = vpop.permute.xlu2 %894 }
 0x2ad   : > { %1031 = vrot.lane.b32.xlu2 %v3185_v23, %s2914_s24  ;;  %1023 = vrot.lane.b32.xlu1 %v3181_v22, %s2914_s24 }
 0x2ae   : > { %1025 = vrot.lane.b32.xlu0 %v3189_v16, %s2914_s24 }
 0x2af   : > { %v885_v29 = vpop.permute.xlu2 %884 }
 0x2b5   : > { %753 = vrot.lane.b32.xlu2 %v3207_v44, %s4181_s22  ;;  %1033 = vrot.lane.b32.xlu1 %v3193_v17, %s2914_s24 }
 0x2b6   : > { %751 = vrot.lane.b32.xlu0 %v3171_v13, %s4181_s22 }
 0x2b7   : > { %v3293_v35 = vpop.permute.xlu2 %843 }
 0x2bd   : > { %1019 = vrot.lane.b32.xlu2 %v3171_v13, %s2914_s24  ;;  %759 = vrot.lane.b32.xlu1 %v3175_v14, %s4181_s22 }
 0x2be   : > { %761 = vrot.lane.b32.xlu0 %v3211_v45, %s4181_s22  ;;  %s2855_s22 = scalar_lea.hbm %s4178_s13, 64 }
 0x2bf   : > { %v854_v25 = vpop.permute.xlu2 %853  ;;  %v887_v26 = vpop.permute.xlu1 %886 }
 0x2c0   : > { %v889_v27 = vpop.permute.xlu0 %888  ;;  %v901_v30 = vsel %vm898_vm4, %v887_v26, %v895_v28  ;;  %v905_v31 = vsel %vm898_vm4, %v895_v28, %v887_v26 }
 0x2c1   : > { %v913_v32 = vmul.f32 %v3307_v50, %v905_v31  ;;  %v914_v33 = vmul.f32 %v3310_v24, %v901_v30 }
 0x2c3   : > { %v919_v36 = vpack.c.bf16 %v914_v33, %v913_v32 }
 0x2c5   : > { %923 = vst [vmem:[#allocation3 + $0x70] sm:$0xff] %v919_v36  ;;  %1029 = vrot.lane.b32.xlu2 %v3211_v45, %s2914_s24  ;;  %1021 = vrot.lane.b32.xlu1 %v3207_v44, %s2914_s24 }
 0x2c6   : > { %1027 = vrot.lane.b32.xlu0 %v3175_v14, %s2914_s24 }
 0x2c7   : > { %v3326_v37 = vpop.permute.xlu2 %847  ;;  %v897_v38 = vpop.permute.xlu1 %896 }
 0x2c8   : > { %v883_v39 = vpop.permute.xlu0 %882  ;;  %v902_v40 = vsel %vm898_vm4, %v889_v27, %v897_v38  ;;  %v906_v41 = vsel %vm898_vm4, %v897_v38, %v889_v27 }
 0x2c9   : > { %v915_v42 = vmul.f32 %v3307_v50, %v906_v41  ;;  %v916_v51 = vmul.f32 %v3310_v24, %v902_v40 }
 0x2cb   : > { %v920_v52 = vpack.c.bf16 %v916_v51, %v915_v42 }
 0x2cc   : > { %v2377_v1 = vld [vmem:[#allocation3 + $0x70] sm:$0xf]  ;;  %v2652_v4 = vld [vmem:[#allocation3 + $0x74] sm:$0xf] }
 0x2cd   : > { %924 = vst [vmem:[#allocation3 + $0x78] sm:$0xff] %v920_v52  ;;  %988 = vrot.lane.b32.xlu2 %v3185_v23, %s4185_s12  ;;  %980 = vrot.lane.b32.xlu1 %v3181_v22, %s4185_s12 }
 0x2ce   : > { %982 = vrot.lane.b32.xlu0 %v3189_v16, %s4185_s12 }
 0x2cf   : > { %v3340_v53 = vpop.permute.xlu2 %802  ;;  %v891_v54 = vpop.permute.xlu1 %890 }
 0x2d0   : > { %v893_v55 = vpop.permute.xlu0 %892  ;;  %v899_v56 = vsel %vm898_vm4, %v883_v39, %v891_v54  ;;  %v903_v57 = vsel %vm898_vm4, %v891_v54, %v883_v39 }
 0x2d1   : > { %v900_v58 = vsel %vm898_vm4, %v885_v29, %v893_v55  ;;  %v904_v59 = vsel %vm898_vm4, %v893_v55, %v885_v29  ;;  %v909_v60 = vmul.f32 %v3307_v50, %v903_v57  ;;  %v910_v61 = vmul.f32 %v3310_v24, %v899_v56 }
 0x2d2   : > { %v911_v62 = vmul.f32 %v3307_v50, %v904_v59  ;;  %v912_v63 = vmul.f32 %v3310_v24, %v900_v58 }
 0x2d3   : > { %v917_v0 = vpack.c.bf16 %v910_v61, %v909_v60 }
 0x2d4   : > { %v918_v2 = vpack.c.bf16 %v912_v63, %v911_v62  ;;  %v2653_v3 = vld [vmem:[#allocation3 + $0x74] sm:$0xf0]  ;;  %v2379_v5 = vld [vmem:[#allocation3 + $0x78] sm:$0xf0]  ;;  %v3422_v62 = vperm.slane %v3299_v49, 1 }
 0x2d5   : > { %921 = vst [vmem:[#allocation3 + $0x60] sm:$0xff] %v917_v0  ;;  %978 = vrot.lane.b32.xlu2 %v3207_v44, %s4185_s12  ;;  %990 = vrot.lane.b32.xlu1 %v3193_v17, %s4185_s12  ;;  %v2378_v8 = vor.u32 %v2653_v3, %v2377_v1  ;;  %v2382_v9 = vor.u32 %v2652_v4, %v2379_v5 }
 0x2d6   : > { %922 = vst [vmem:[#allocation3 + $0x68] sm:$0xff] %v918_v2  ;;  %976 = vrot.lane.b32.xlu0 %v3171_v13, %s4185_s12 }
 0x2d7   : > { %v3367_v10 = vpop.permute.xlu2 %1066  ;;  %1390 = vmatpush.bf16.msra.mxu0 %v2378_v8  ;;  %1447 = vmatpush.bf16.msra.mxu3 %v2382_v9  ;;  %v846_v11 = vpop.permute.xlu1 %845  ;;  %v1152_v9 = vld [vmem:[%s4174_s9 + $0x18] sm:$0xff] }
 0x2d8   : > { %v852_v12 = vpop.permute.xlu0 %851  ;;  %v859_v15 = vsel %vm855_vm5, %v846_v11, %v854_v25  ;;  %v863_v20 = vsel %vm855_vm5, %v854_v25, %v846_v11 }
 0x2d9   : > { %v858_v21 = vsel %vm855_vm5, %v3293_v35, %v852_v12  ;;  %v862_v18 = vsel %vm855_vm5, %v852_v12, %v3293_v35  ;;  %v872_v19 = vmul.f32 %v3360_v6, %v863_v20  ;;  %v873_v43 = vmul.f32 %v3363_v7, %v859_v15  ;;  %v1151_v12 = vld [vmem:[%s4174_s9 + $0x10] sm:$0xff] }
 0x2da   : > { %v870_v46 = vmul.f32 %v3360_v6, %v862_v18  ;;  %v871_v28 = vmul.f32 %v3363_v7, %v858_v21 }
 0x2db   : > { %v877_v29 = vpack.c.bf16 %v873_v43, %v872_v19  ;;  %v3451_v19 = vld [vmem:[#allocation4 + $0x10] ss:$0 sm:$0xff]  ;;  %v3453_v43 = vld [vmem:[#allocation4 + $0x18] ss:$0 sm:$0xff] }
 0x2dc   : > { %v876_v34 = vpack.c.bf16 %v871_v28, %v870_v46  ;;  %v2369_v26 = vld [vmem:[#allocation3 + $0x60] sm:$0xf]  ;;  %v2650_v25 = vld [vmem:[#allocation3 + $0x64] sm:$0xf] }
 0x2dd   : > { %881 = vst [vmem:[#allocation3 + $0x58] sm:$0xff] %v877_v29  ;;  %937 = vrot.lane.b32.xlu2 %v3181_v22, %s4187_s30  ;;  %984 = vrot.lane.b32.xlu1 %v3175_v14, %s4185_s12  ;;  %v2651_v35 = vld [vmem:[#allocation3 + $0x64] sm:$0xf0]  ;;  %v2371_v27 = vld [vmem:[#allocation3 + $0x68] sm:$0xf0] }
 0x2de   : > { %880 = vst [vmem:[#allocation3 + $0x50] sm:$0xff] %v876_v34  ;;  %986 = vrot.lane.b32.xlu0 %v3211_v45, %s4185_s12  ;;  %v2370_v30 = vor.u32 %v2651_v35, %v2369_v26  ;;  %v2374_v31 = vor.u32 %v2650_v25, %v2371_v27  ;;  %s4199_s12 = smov 113  }
 0x2df   : > { %v3389_v32 = vpop.permute.xlu2 %1076  ;;  %v840_v33 = vpop.permute.xlu1 %839 }
 0x2e0   : > { %v842_v36 = vpop.permute.xlu0 %841  ;;  %1391 = vmatpush.bf16.msra.mxu0 %v2370_v30  ;;  %1448 = vmatpush.bf16.msra.mxu3 %v2374_v31  ;;  %v856_v22 = vsel %vm855_vm5, %v840_v33, %v3326_v37  ;;  %v860_v38 = vsel %vm855_vm5, %v3326_v37, %v840_v33 }
 0x2e1   : > { %v866_v39 = vmul.f32 %v3360_v6, %v860_v38  ;;  %v867_v40 = vmul.f32 %v3363_v7, %v856_v22  ;;  %v1150_v38 = vld [vmem:[%s4174_s9 + $0x8] sm:$0xff] }
 0x2e3   : > { %v874_v41 = vpack.c.bf16 %v867_v40, %v866_v39 }
 0x2e4   : > { %v2649_v42 = vld [vmem:[#allocation3 + $0x54] sm:$0xf0]  ;;  %v2363_v51 = vld [vmem:[#allocation3 + $0x58] sm:$0xf0] }
 0x2e5   : > { %878 = vst [vmem:[#allocation3 + $0x40] sm:$0xff] %v874_v41  ;;  %947 = vrot.lane.b32.xlu2 %v3193_v17, %s4187_s30  ;;  %939 = vrot.lane.b32.xlu1 %v3189_v16, %s4187_s30  ;;  %v2361_v52 = vld [vmem:[#allocation3 + $0x50] sm:$0xf]  ;;  %v2648_v54 = vld [vmem:[#allocation3 + $0x54] sm:$0xf] }
 0x2e6   : > { %945 = vrot.lane.b32.xlu0 %v3185_v23, %s4187_s30  ;;  %v2362_v37 = vor.u32 %v2649_v42, %v2361_v52  ;;  %v2366_v55 = vor.u32 %v2648_v54, %v2363_v51  ;;  %v3419_v23 = vperm.slane %v3297_v48, 1 }
 0x2e7   : > { %v3405_v56 = vpop.permute.xlu2 %804  ;;  %v850_v57 = vpop.permute.xlu1 %849 }
 0x2e8   : > { %v801_v58 = vpop.permute.xlu0 %800  ;;  %1392 = vmatpush.bf16.msra.mxu0 %v2362_v37  ;;  %1449 = vmatpush.bf16.msra.mxu3 %v2366_v55  ;;  %v857_v59 = vsel %vm855_vm5, %v842_v36, %v850_v57  ;;  %v861_v17 = vsel %vm855_vm5, %v850_v57, %v842_v36 }
 0x2e9   : > { %v868_v16 = vmul.f32 %v3360_v6, %v861_v17  ;;  %v869_v60 = vmul.f32 %v3363_v7, %v857_v59 }
 0x2eb   : > { %v875_v61 = vpack.c.bf16 %v869_v60, %v868_v16 }
 0x2ec   : > { %v2353_v15 = vld [vmem:[#allocation3 + $0x40] sm:$0xf]  ;;  %v2646_v21 = vld [vmem:[#allocation3 + $0x44] sm:$0xf] }
 0x2ed   : > { %879 = vst [vmem:[#allocation3 + $0x48] sm:$0xff] %v875_v61  ;;  %941 = vrot.lane.b32.xlu2 %v3175_v14, %s4187_s30  ;;  %933 = vrot.lane.b32.xlu1 %v3171_v13, %s4187_s30 }
 0x2ee   : > { %935 = vrot.lane.b32.xlu0 %v3207_v44, %s4187_s30 }
 0x2ef   : > { %v809_v63 = vpop.permute.xlu1 %808  ;;  %v3430_v13 = vpop.permute.xlu2 %1064 }
 0x2f0   : > { %v811_v0 = vpop.permute.xlu0 %810  ;;  %v815_v1 = vsel %vm812_vm6, %v801_v58, %v809_v63  ;;  %v819_v14 = vsel %vm812_vm6, %v809_v63, %v801_v58 }
 0x2f1   : > { %v816_v2 = vsel %vm812_vm6, %v3340_v53, %v811_v0  ;;  %v820_v3 = vsel %vm812_vm6, %v811_v0, %v3340_v53  ;;  %v827_v44 = vmul.f32 %v3419_v23, %v819_v14  ;;  %v828_v4 = vmul.f32 %v3422_v62, %v815_v1 }
 0x2f2   : > { %v829_v5 = vmul.f32 %v3419_v23, %v820_v3  ;;  %v830_v8 = vmul.f32 %v3422_v62, %v816_v2 }
 0x2f3   : > { %v833_v11 = vpack.c.bf16 %v828_v4, %v827_v44 }
 0x2f4   : > { %v834_v20 = vpack.c.bf16 %v830_v8, %v829_v5  ;;  %v2647_v53 = vld [vmem:[#allocation3 + $0x44] sm:$0xf0]  ;;  %v2355_v18 = vld [vmem:[#allocation3 + $0x48] sm:$0xf0] }
 0x2f5   : > { %837 = vst [vmem:[#allocation3 + $0x30] sm:$0xff] %v833_v11  ;;  %1170 = vperm.xlu2 %2780, %v1152_v9   ;;  %943 = vrot.lane.b32.xlu1 %v3211_v45, %s4187_s30  ;;  %v2354_v46 = vor.u32 %v2647_v53, %v2353_v15  ;;  %v2358_v28 = vor.u32 %v2646_v21, %v2355_v18  ;;  %s4198_s30 = smov 127  }
 0x2f6   : > { %838 = vst [vmem:[#allocation3 + $0x38] sm:$0xff] %v834_v20  ;;  %1165 = vperm.xlu0 %2778, %v1151_v12  }
 0x2f7   : > { %1393 = vmatpush.bf16.msra.mxu0 %v2354_v46  ;;  %1450 = vmatpush.bf16.msra.mxu3 %v2358_v28  ;;  %v1069_v29 = vpop.permute.xlu1 %1068  ;;  %v3474_v36 = vpop.permute.xlu2 %755 }
 0x2f8   : > { %v1075_v34 = vpop.permute.xlu0 %1074  ;;  %v1082_v26 = vsel %vm1078_vm7, %v1069_v29, %v3389_v32  ;;  %v1086_v45 = vsel %vm1078_vm7, %v3389_v32, %v1069_v29  ;;  %v1149_v32 = vld [vmem:[%s4174_s9] sm:$0xff] }
 0x2f9   : > { %v1081_v25 = vsel %vm1078_vm7, %v3367_v10, %v1075_v34  ;;  %v1085_v35 = vsel %vm1078_vm7, %v1075_v34, %v3367_v10  ;;  %v1095_v27 = vmul.f32 %v3451_v19, %v1082_v26  ;;  %v1096_v30 = vmul.f32 %v3453_v43, %v1086_v45 }
 0x2fa   : > { %v1093_v31 = vmul.f32 %v3451_v19, %v1081_v25  ;;  %v1094_v33 = vmul.f32 %v3453_v43, %v1085_v35  ;;  %v3509_v25 = vperm.slane %v3297_v48, 0 }
 0x2fb   : > { %v1100_v22 = vpack.c.bf16 %v1096_v30, %v1095_v27 }
 0x2fc   : > { %v1099_v10 = vpack.c.bf16 %v1094_v33, %v1093_v31  ;;  %v2345_v39 = vld [vmem:[#allocation3 + $0x30] sm:$0xf]  ;;  %v2644_v40 = vld [vmem:[#allocation3 + $0x34] sm:$0xf] }
 0x2fd   : > { %1104 = vst [vmem:[#allocation3 + $0x118] sm:$0xff] %v1100_v22  ;;  %1155 = vperm.xlu1 %2779, %v1149_v32   ;;  %v2645_v41 = vld [vmem:[#allocation3 + $0x34] sm:$0xf0]  ;;  %v2347_v42 = vld [vmem:[#allocation3 + $0x38] sm:$0xf0] }
 0x2fe   : > { %1103 = vst [vmem:[#allocation3 + $0x110] sm:$0xff] %v1099_v10  ;;  %1160 = vperm.xlu0 %2778, %v1150_v38   ;;  %v2346_v51 = vor.u32 %v2645_v41, %v2345_v39  ;;  %v2350_v52 = vor.u32 %v2644_v40, %v2347_v42 }
 0x2ff   : > { %v797_v54 = vpop.permute.xlu1 %796  ;;  %v766_v60 = vpop.permute.xlu2 %765 }
 0x300   : > { %v799_v37 = vpop.permute.xlu0 %798  ;;  %1394 = vmatpush.bf16.msra.mxu0 %v2346_v51  ;;  %1451 = vmatpush.bf16.msra.mxu3 %v2350_v52  ;;  %v813_v55 = vsel %vm812_vm6, %v797_v54, %v3405_v56  ;;  %v817_v57 = vsel %vm812_vm6, %v3405_v56, %v797_v54  ;;  %v3530_v54 = vperm.slane %v3297_v48, 7 }
 0x301   : > { %v823_v58 = vmul.f32 %v3419_v23, %v817_v57  ;;  %v824_v59 = vmul.f32 %v3422_v62, %v813_v55 }
 0x303   : > { %v831_v17 = vpack.c.bf16 %v824_v59, %v823_v58 }
 0x304   : > { %v2673_v16 = vld [vmem:[#allocation3 + $0x114] sm:$0xf0] }
 0x305   : > { %835 = vst [vmem:[#allocation3 + $0x20] sm:$0xff] %v831_v17  ;;  %v2457_v61 = vld [vmem:[#allocation3 + $0x110] sm:$0xf] }
 0x306   : > { %v2458_v63 = vor.u32 %v2673_v16, %v2457_v61 }
 0x307   : > { %v807_v0 = vpop.permute.xlu1 %806  ;;  %v1032_v4 = vpop.permute.xlu2 %1031 }
 0x308   : > { %v1063_v1 = vpop.permute.xlu0 %1062  ;;  %1434 = vmatpush.bf16.msra.mxu2 %v2458_v63  ;;  %v814_v14 = vsel %vm812_vm6, %v799_v37, %v807_v0  ;;  %v818_v2 = vsel %vm812_vm6, %v807_v0, %v799_v37 }
 0x309   : > { %v825_v56 = vmul.f32 %v3419_v23, %v818_v2  ;;  %v826_v3 = vmul.f32 %v3422_v62, %v814_v14 }
 0x30b   : > { %v832_v44 = vpack.c.bf16 %v826_v3, %v825_v56 }
 0x30c   : > { %v2337_v28 = vld [vmem:[#allocation3 + $0x20] sm:$0xf]  ;;  %v2642_v26 = vld [vmem:[#allocation3 + $0x24] sm:$0xf] }
 0x30d   : > { %836 = vst [vmem:[#allocation3 + $0x28] sm:$0xff] %v832_v44 }
 0x30f   : > { %v1071_v5 = vpop.permute.xlu1 %1070  ;;  %v754_v33 = vpop.permute.xlu2 %753 }
 0x310   : > { %v1073_v8 = vpop.permute.xlu0 %1072  ;;  %v1079_v9 = vsel %vm1078_vm7, %v1063_v1, %v1071_v5  ;;  %v1083_v11 = vsel %vm1078_vm7, %v1071_v5, %v1063_v1 }
 0x311   : > { %v1080_v12 = vsel %vm1078_vm7, %v3430_v13, %v1073_v8  ;;  %v1084_v15 = vsel %vm1078_vm7, %v1073_v8, %v3430_v13  ;;  %v1089_v20 = vmul.f32 %v3451_v19, %v1079_v9  ;;  %v1090_v53 = vmul.f32 %v3453_v43, %v1083_v11 }
 0x312   : > { %v1091_v21 = vmul.f32 %v3451_v19, %v1080_v12  ;;  %v1092_v18 = vmul.f32 %v3453_v43, %v1084_v15  ;;  %v3512_v13 = vperm.slane %v3299_v49, 0 }
 0x313   : > { %v1097_v46 = vpack.c.bf16 %v1090_v53, %v1089_v20 }
 0x314   : > { %v1098_v29 = vpack.c.bf16 %v1092_v18, %v1091_v21  ;;  %v2643_v34 = vld [vmem:[#allocation3 + $0x24] sm:$0xf0]  ;;  %v2339_v45 = vld [vmem:[#allocation3 + $0x28] sm:$0xf0] }
 0x315   : > { %1101 = vst [vmem:[#allocation3 + $0x100] sm:$0xff] %v1097_v46  ;;  %v2338_v35 = vor.u32 %v2643_v34, %v2337_v28  ;;  %v2342_v27 = vor.u32 %v2642_v26, %v2339_v45 }
 0x316   : > { %1102 = vst [vmem:[#allocation3 + $0x108] sm:$0xff] %v1098_v29 }
 0x317   : > { %1395 = vmatpush.bf16.msra.mxu0 %v2338_v35  ;;  %1452 = vmatpush.bf16.msra.mxu3 %v2342_v27  ;;  %v758_v19 = vpop.permute.xlu1 %757 }
 0x318   : > { %v764_v43 = vpop.permute.xlu0 %763  ;;  %v773_v30 = vsel %vm769_vm8, %v758_v19, %v766_v60  ;;  %v777_v31 = vsel %vm769_vm8, %v766_v60, %v758_v19  ;;  %v1020_v60 = vpop.permute.xlu2 %1019 }
 0x319   : > { %v772_v32 = vsel %vm769_vm8, %v3474_v36, %v764_v43  ;;  %v776_v22 = vsel %vm769_vm8, %v764_v43, %v3474_v36  ;;  %v786_v38 = vmul.f32 %v3509_v25, %v777_v31  ;;  %v787_v10 = vmul.f32 %v3512_v13, %v773_v30 }
 0x31a   : > { %v784_v39 = vmul.f32 %v3509_v25, %v776_v22  ;;  %v785_v40 = vmul.f32 %v3512_v13, %v772_v32  ;;  %v3533_v36 = vperm.slane %v3299_v49, 7 }
 0x31b   : > { %v791_v41 = vpack.c.bf16 %v787_v10, %v786_v38 }
 0x31c   : > { %v790_v42 = vpack.c.bf16 %v785_v40, %v784_v39  ;;  %v2449_v51 = vld [vmem:[#allocation3 + $0x100] sm:$0xf] }
 0x31d   : > { %795 = vst [vmem:[#allocation3 + $0x18] sm:$0xff] %v791_v41  ;;  %v2671_v52 = vld [vmem:[#allocation3 + $0x104] sm:$0xf0] }
 0x31e   : > { %794 = vst [vmem:[#allocation3 + $0x10] sm:$0xff] %v790_v42  ;;  %v2450_v37 = vor.u32 %v2671_v52, %v2449_v51 }
 0x31f   : > { %v1024_v55 = vpop.permute.xlu1 %1023 }
 0x320   : > { %v1026_v57 = vpop.permute.xlu0 %1025  ;;  %1435 = vmatpush.bf16.msra.mxu2 %v2450_v37  ;;  %v1038_v58 = vsel %vm1035_vm9, %v1024_v55, %v1032_v4  ;;  %v1042_v59 = vsel %vm1035_vm9, %v1032_v4, %v1024_v55  ;;  %v1030_v12 = vpop.permute.xlu2 %1029  ;;  %v2459_v55 = vld [vmem:[#allocation3 + $0x118] sm:$0xf0] }
 0x321   : > { %v1050_v17 = vmul.f32 %v3530_v54, %v1038_v58  ;;  %v1051_v16 = vmul.f32 %v3533_v36, %v1042_v59  ;;  %v3573_v58 = vperm.slane %v3297_v48, 6  ;;  %v2672_v59 = vld [vmem:[#allocation3 + $0x114] sm:$0xf] }
 0x323   : > { %v1056_v61 = vpack.c.bf16 %v1051_v16, %v1050_v17  ;;  %v2297_v17 = vld [vmem:[%s4173_s8] sm:$0xf] }
 0x324   : > { %v2641_v63 = vld [vmem:[#allocation3 + $0x14] sm:$0xf0]  ;;  %v2331_v0 = vld [vmem:[#allocation3 + $0x18] sm:$0xf0] }
 0x325   : > { %1060 = vst [vmem:[#allocation3 + $0xf0] sm:$0xff] %v1056_v61  ;;  %v2329_v1 = vld [vmem:[#allocation3 + $0x10] sm:$0xf]  ;;  %v2640_v14 = vld [vmem:[#allocation3 + $0x14] sm:$0xf] }
 0x326   : > { %v2330_v2 = vor.u32 %v2641_v63, %v2329_v1  ;;  %v2334_v56 = vor.u32 %v2640_v14, %v2331_v0  ;;  %v2633_v63 = vld [vmem:[%s4173_s8 + $0x8] sm:$0xf0]  ;;  %v3582_v14 = vperm.slane %v3299_v49, 6 }
 0x327   : > { %v1034_v3 = vpop.permute.xlu1 %1033 }
 0x328   : > { %v752_v44 = vpop.permute.xlu0 %751  ;;  %1396 = vmatpush.bf16.msra.mxu0 %v2330_v2  ;;  %1453 = vmatpush.bf16.msra.mxu3 %v2334_v56  ;;  %v1039_v4 = vsel %vm1035_vm9, %v1026_v57, %v1034_v3  ;;  %v1043_v5 = vsel %vm1035_vm9, %v1034_v3, %v1026_v57  ;;  %v989_v22 = vpop.permute.xlu2 %988 }
 0x329   : > { %v1052_v8 = vmul.f32 %v3530_v54, %v1039_v4  ;;  %v1053_v9 = vmul.f32 %v3533_v36, %v1043_v5  ;;  %v2298_v4 = vor.u32 %v2633_v63, %v2297_v17  ;;  %v2670_v5 = vld [vmem:[#allocation3 + $0x104] sm:$0xf] }
 0x32b   : > { %v1057_v11 = vpack.c.bf16 %v1053_v9, %v1052_v8 }
 0x32c   : > { %v2441_v35 = vld [vmem:[#allocation3 + $0xf0] sm:$0xf]  ;;  %v2668_v43 = vld [vmem:[#allocation3 + $0xf4] sm:$0xf] }
 0x32d   : > { %1061 = vst [vmem:[#allocation3 + $0xf8] sm:$0xff] %v1057_v11 }
 0x32f   : > { %v760_v15 = vpop.permute.xlu1 %759 }
 0x330   : > { %v762_v20 = vpop.permute.xlu0 %761  ;;  %v770_v53 = vsel %vm769_vm8, %v752_v44, %v760_v15  ;;  %v774_v21 = vsel %vm769_vm8, %v760_v15, %v752_v44  ;;  %v2462_v44 = vor.u32 %v2672_v59, %v2459_v55  ;;  %v2305_v15 = vld [vmem:[%s4173_s8 + $0x8] sm:$0xf]  ;;  %v2317_v55 = vld [vmem:[%s4173_s8 + $0x20] sm:$0xf] }
 0x331   : > { %v771_v18 = vsel %vm769_vm8, %v754_v33, %v762_v20  ;;  %v775_v46 = vsel %vm769_vm8, %v762_v20, %v754_v33  ;;  %v780_v28 = vmul.f32 %v3509_v25, %v774_v21  ;;  %v781_v29 = vmul.f32 %v3512_v13, %v770_v53  ;;  %v2634_v20 = vld [vmem:[%s4173_s8 + $0x10] sm:$0xf0]  ;;  %v979_v53 = vpop.permute.xlu2 %978 }
 0x332   : > { %v782_v34 = vmul.f32 %v3509_v25, %v775_v46  ;;  %v783_v26 = vmul.f32 %v3512_v13, %v771_v18  ;;  %v3596_v46 = vor.u32 %v2634_v20, %v2305_v15 }
 0x333   : > { %v788_v45 = vpack.c.bf16 %v781_v29, %v780_v28 }
 0x334   : > { %v789_v27 = vpack.c.bf16 %v783_v26, %v782_v34  ;;  %v2669_v19 = vld [vmem:[#allocation3 + $0xf4] sm:$0xf0]  ;;  %v2443_v30 = vld [vmem:[#allocation3 + $0xf8] sm:$0xf0]  ;;  %2463 = vmatmul.msk.bf16.vlgmr.msra.gmra.mxu2 %vm1383_vm11, %v3596_v46 }
 0x335   : > { %792 = vst [vmem:[#allocation3] sm:$0xff] %v788_v45  ;;  %v2442_v31 = vor.u32 %v2669_v19, %v2441_v35  ;;  %v2446_v32 = vor.u32 %v2668_v43, %v2443_v30 }
 0x336   : > { %793 = vst [vmem:[#allocation3 + $0x8] sm:$0xff] %v789_v27 }
 0x337   : > { %1409 = vmatpush.bf16.msra.mxu1 %v2442_v31  ;;  %1466 = vmatpush.bf16.msrb.mxu2 %v2446_v32  ;;  %v1022_v33 = vpop.permute.xlu1 %1021 }
 0x338   : > { %v1028_v38 = vpop.permute.xlu0 %1027  ;;  %v1037_v10 = vsel %vm1035_vm9, %v1022_v33, %v1030_v12  ;;  %v1041_v39 = vsel %vm1035_vm9, %v1030_v12, %v1022_v33  ;;  %v2451_v12 = vld [vmem:[#allocation3 + $0x108] sm:$0xf0] }
 0x339   : > { %v1036_v40 = vsel %vm1035_vm9, %v1020_v60, %v1028_v38  ;;  %v1040_v41 = vsel %vm1035_vm9, %v1028_v38, %v1020_v60  ;;  %v1048_v42 = vmul.f32 %v3530_v54, %v1037_v10  ;;  %v1049_v51 = vmul.f32 %v3533_v36, %v1041_v39  ;;  %v938_v38 = vpop.permute.xlu2 %937  ;;  %v2309_v39 = vld [vmem:[%s4173_s8 + $0x18] sm:$0xf] }
 0x33a   : > { %v1046_v52 = vmul.f32 %v3530_v54, %v1036_v40  ;;  %v1047_v37 = vmul.f32 %v3533_v36, %v1040_v41  ;;  %v2454_v29 = vor.u32 %v2670_v5, %v2451_v12  ;;  %v2636_v40 = vld [vmem:[%s4173_s8 + $0x20] sm:$0xf0] }
 0x33b   : > { %v1055_v57 = vpack.c.bf16 %v1049_v51, %v1048_v42  ;;  %v2310_v42 = vor.u32 %v2636_v40, %v2309_v39 }
 0x33c   : > { %v1054_v16 = vpack.c.bf16 %v1047_v37, %v1046_v52  ;;  %v2321_v60 = vld [vmem:[#allocation3] sm:$0xf]  ;;  %v2638_v61 = vld [vmem:[#allocation3 + $0x4] sm:$0xf] }
 0x33d   : > { %1059 = vst [vmem:[#allocation3 + $0xe8] sm:$0xff] %v1055_v57  ;;  %v2639_v0 = vld [vmem:[#allocation3 + $0x4] sm:$0xf0]  ;;  %v2323_v1 = vld [vmem:[#allocation3 + $0x8] sm:$0xf0] }
 0x33e   : > { %1058 = vst [vmem:[#allocation3 + $0xe0] sm:$0xff] %v1054_v16  ;;  %v2322_v2 = vor.u32 %v2639_v0, %v2321_v60  ;;  %v2326_v56 = vor.u32 %v2638_v61, %v2323_v1  ;;  %v2637_v57 = vld [vmem:[%s4173_s8 + $0x28] sm:$0xf0] }
 0x33f   : > { %v981_v3 = vpop.permute.xlu1 %980  ;;  %v3630_v0 = vor.u32 %v2637_v57, %v2317_v55 }
 0x340   : > { %v983_v8 = vpop.permute.xlu0 %982  ;;  %1397 = vmatpush.bf16.msra.mxu0 %v2322_v2  ;;  %1454 = vmatpush.bf16.msra.mxu3 %v2326_v56  ;;  %v995_v9 = vsel %vm992_vm10, %v981_v3, %v989_v22  ;;  %v999_v11 = vsel %vm992_vm10, %v989_v22, %v981_v3 }
 0x341   : > { %v1007_v21 = vmul.f32 %v3573_v58, %v995_v9  ;;  %v1008_v18 = vmul.f32 %v3582_v14, %v999_v11  ;;  %v948_v5 = vpop.permute.xlu2 %947  ;;  %v3639_v9 = vperm.slane %v3299_v49, 5 }
 0x343   : > { %v1013_v28 = vpack.c.bf16 %v1008_v18, %v1007_v21  ;;  %1398 = vmatmul.bf16.vlgmr.msra.gmra.mxu0 %v2298_v4  ;;  %1455 = vmatmul.bf16.vlgmr.msra.gmra.mxu3 %v2298_v4 }
 0x344   : > { %1491 = vmatpush.bf16.msrb.mxu0 %v2462_v44  ;;  %v2667_v34 = vld [vmem:[#allocation3 + $0xe4] sm:$0xf0]  ;;  %v2435_v26 = vld [vmem:[#allocation3 + $0xe8] sm:$0xf0]  ;;  %2464 = vmatmul.msk.bf16.gmra.mxu2 %vm1383_vm11, %v3630_v0 }
 0x345   : > { %1017 = vst [vmem:[#allocation3 + $0xd0] sm:$0xff] %v1013_v28  ;;  %v2433_v45 = vld [vmem:[#allocation3 + $0xe0] sm:$0xf]  ;;  %v2666_v35 = vld [vmem:[#allocation3 + $0xe4] sm:$0xf] }
 0x346   : > { %v2434_v27 = vor.u32 %v2667_v34, %v2433_v45  ;;  %v2438_v19 = vor.u32 %v2666_v35, %v2435_v26 }
 0x347   : > { %v991_v43 = vpop.permute.xlu1 %990 }
 0x348   : > { %1492 = vmatpush.bf16.msrb.mxu0 %v2454_v29  ;;  %v977_v30 = vpop.permute.xlu0 %976  ;;  %1410 = vmatpush.bf16.msra.mxu1 %v2434_v27  ;;  %v996_v31 = vsel %vm992_vm10, %v983_v8, %v991_v43  ;;  %v1000_v32 = vsel %vm992_vm10, %v991_v43, %v983_v8  ;;  %v3636_v8 = vperm.slane %v3297_v48, 5 }
 0x349   : > { %1467 = vmatpush.bf16.msrb.mxu2 %v2438_v19  ;;  %v1009_v22 = vmul.f32 %v3573_v58, %v996_v31  ;;  %v1010_v33 = vmul.f32 %v3582_v14, %v1000_v32  ;;  %v942_v32 = vpop.permute.xlu2 %941 }
 0x34b   : > { %v1014_v10 = vpack.c.bf16 %v1010_v33, %v1009_v22 }
 0x34c   : > { %v2425_v2 = vld [vmem:[#allocation3 + $0xd0] sm:$0xf]  ;;  %v2664_v44 = vld [vmem:[#allocation3 + $0xd4] sm:$0xf] }
 0x34d   : > { %1018 = vst [vmem:[#allocation3 + $0xd8] sm:$0xff] %v1014_v10 }
 0x34f   : > { %v985_v41 = vpop.permute.xlu1 %984 }
 0x350   : > { %v987_v51 = vpop.permute.xlu0 %986  ;;  %v993_v52 = vsel %vm992_vm10, %v977_v30, %v985_v41  ;;  %v997_v37 = vsel %vm992_vm10, %v985_v41, %v977_v30 }
 0x351   : > { %v994_v59 = vsel %vm992_vm10, %v979_v53, %v987_v51  ;;  %v998_v17 = vsel %vm992_vm10, %v987_v51, %v979_v53  ;;  %v1003_v16 = vmul.f32 %v3573_v58, %v993_v52  ;;  %v1004_v60 = vmul.f32 %v3582_v14, %v997_v37 }
 0x352   : > { %v1005_v61 = vmul.f32 %v3573_v58, %v994_v59  ;;  %v1006_v63 = vmul.f32 %v3582_v14, %v998_v17 }
 0x353   : > { %v1011_v1 = vpack.c.bf16 %v1004_v60, %v1003_v16  ;;  %1403 = vmatmul.bf16.gmra.mxu0 %v2310_v42  ;;  %1460 = vmatmul.bf16.gmra.mxu3 %v2310_v42 }
 0x354   : > { %v1012_v56 = vpack.c.bf16 %v1006_v63, %v1005_v61  ;;  %v2665_v3 = vld [vmem:[#allocation3 + $0xd4] sm:$0xf0]  ;;  %v2427_v4 = vld [vmem:[#allocation3 + $0xd8] sm:$0xf0] }
 0x355   : > { %1015 = vst [vmem:[#allocation3 + $0xc0] sm:$0xff] %v1011_v1  ;;  %v2426_v11 = vor.u32 %v2665_v3, %v2425_v2  ;;  %v2430_v12 = vor.u32 %v2664_v44, %v2427_v4  ;;  %v2393_v4 = vld [vmem:[#allocation3 + $0x90] sm:$0xf] }
 0x356   : > { %1016 = vst [vmem:[#allocation3 + $0xc8] sm:$0xff] %v1012_v56 }
 0x357   : > { %1411 = vmatpush.bf16.msra.mxu1 %v2426_v11  ;;  %1468 = vmatpush.bf16.msrb.mxu2 %v2430_v12  ;;  %v940_v15 = vpop.permute.xlu1 %939  ;;  %v2656_v11 = vld [vmem:[#allocation3 + $0x94] sm:$0xf]  ;;  %v2395_v12 = vld [vmem:[#allocation3 + $0x98] sm:$0xf0] }
 0x358   : > { %v946_v20 = vpop.permute.xlu0 %945  ;;  %v953_v53 = vsel %vm949_vm12, %v940_v15, %v948_v5  ;;  %v957_v21 = vsel %vm949_vm12, %v948_v5, %v940_v15  ;;  %v2657_v5 = vld [vmem:[#allocation3 + $0x94] sm:$0xf0] }
 0x359   : > { %v952_v48 = vsel %vm949_vm12, %v938_v38, %v946_v20  ;;  %v956_v49 = vsel %vm949_vm12, %v946_v20, %v938_v38  ;;  %v966_v18 = vmul.f32 %v3636_v8, %v953_v53  ;;  %v967_v28 = vmul.f32 %v3639_v9, %v957_v21  ;;  %v2655_v53 = vld [vmem:[#allocation3 + $0x84] sm:$0xf0]  ;;  %v2387_v21 = vld [vmem:[#allocation3 + $0x88] sm:$0xf0] }
 0x35a   : > { %v964_v29 = vmul.f32 %v3636_v8, %v952_v48  ;;  %v965_v34 = vmul.f32 %v3639_v9, %v956_v49  ;;  %v2394_v15 = vor.u32 %v2657_v5, %v2393_v4  ;;  %v2398_v20 = vor.u32 %v2656_v11, %v2395_v12  ;;  %v2299_v48 = vld [vmem:[%s4173_s8 + $0xc] sm:$0xf0]  ;;  %v2385_v49 = vld [vmem:[#allocation3 + $0x80] sm:$0xf] }
 0x35b   : > { %v971_v26 = vpack.c.bf16 %v967_v28, %v966_v18  ;;  %v2654_v18 = vld [vmem:[#allocation3 + $0x84] sm:$0xf]  ;;  %v2386_v28 = vor.u32 %v2655_v53, %v2385_v49 }
 0x35c   : > { %v970_v45 = vpack.c.bf16 %v965_v34, %v964_v29  ;;  %v2417_v35 = vld [vmem:[#allocation3 + $0xc0] sm:$0xf]  ;;  %v2662_v27 = vld [vmem:[#allocation3 + $0xc4] sm:$0xf]  ;;  %v2390_v29 = vor.u32 %v2654_v18, %v2387_v21 }
 0x35d   : > { %975 = vst [vmem:[#allocation3 + $0xb8] sm:$0xff] %v971_v26  ;;  %v2663_v19 = vld [vmem:[#allocation3 + $0xc4] sm:$0xf0]  ;;  %v2419_v43 = vld [vmem:[#allocation3 + $0xc8] sm:$0xf0] }
 0x35e   : > { %974 = vst [vmem:[#allocation3 + $0xb0] sm:$0xff] %v970_v45  ;;  %v2418_v30 = vor.u32 %v2663_v19, %v2417_v35  ;;  %v2422_v31 = vor.u32 %v2662_v27, %v2419_v43  ;;  %v2635_v26 = vld [vmem:[%s4173_s8 + $0x1c] sm:$0xf]  ;;  %v2311_v45 = vld [vmem:[%s4173_s8 + $0x24] sm:$0xf0] }
 0x35f   : > { %v934_v22 = vpop.permute.xlu1 %933  ;;  %v2314_v35 = vor.u32 %v2635_v26, %v2311_v45  ;;  %v1171_v26 = vpop.permute.xlu2 %1170 }
 0x360   : > { %1412 = vmatpush.bf16.msra.mxu1 %v2418_v30  ;;  %1469 = vmatpush.bf16.msrb.mxu2 %v2422_v31  ;;  %v950_v33 = vsel %vm949_vm12, %v934_v22, %v942_v32  ;;  %v954_v38 = vsel %vm949_vm12, %v942_v32, %v934_v22  ;;  %v936_v57 = vpop.permute.xlu0 %935 }
 0x361   : > { %v960_v10 = vmul.f32 %v3636_v8, %v950_v33  ;;  %v961_v39 = vmul.f32 %v3639_v9, %v954_v38 }
 0x363   : > { %v968_v40 = vpack.c.bf16 %v961_v39, %v960_v10  ;;  %2465 = vmatmul.msk.bf16.vlgmr.msrb.gmra.mxu0 %vm1383_vm11, %v3596_v46 }
 0x364   : > { %v2661_v41 = vld [vmem:[#allocation3 + $0xb4] sm:$0xf0]  ;;  %v2411_v42 = vld [vmem:[#allocation3 + $0xb8] sm:$0xf0] }
 0x365   : > { %972 = vst [vmem:[#allocation3 + $0xa0] sm:$0xff] %v968_v40  ;;  %v2409_v51 = vld [vmem:[#allocation3 + $0xb0] sm:$0xf]  ;;  %v2660_v52 = vld [vmem:[#allocation3 + $0xb4] sm:$0xf] }
 0x366   : > { %v2410_v37 = vor.u32 %v2661_v41, %v2409_v51  ;;  %v2414_v55 = vor.u32 %v2660_v52, %v2411_v42 }
 0x367   : > { %v944_v59 = vpop.permute.xlu1 %943 }
 0x368   : > { %1413 = vmatpush.bf16.msra.mxu1 %v2410_v37  ;;  %1470 = vmatpush.bf16.msrb.mxu2 %v2414_v55  ;;  %v951_v17 = vsel %vm949_vm12, %v936_v57, %v944_v59  ;;  %v955_v16 = vsel %vm949_vm12, %v944_v59, %v936_v57  ;;  %v1166_v10 = vpop.permute.xlu0 %1165 }
 0x369   : > { %v962_v60 = vmul.f32 %v3636_v8, %v951_v17  ;;  %v963_v46 = vmul.f32 %v3639_v9, %v955_v16 }
 0x36b   : > { %v969_v61 = vpack.c.bf16 %v963_v46, %v962_v60 }
 0x36c   : > { %v2401_v63 = vld [vmem:[#allocation3 + $0xa0] sm:$0xf]  ;;  %v2658_v2 = vld [vmem:[#allocation3 + $0xa4] sm:$0xf] }
 0x36d   : > { %973 = vst [vmem:[#allocation3 + $0xa8] sm:$0xff] %v969_v61 }
 0x36f   : > { %v1156_v39 = vpop.permute.xlu1 %1155 }
 0x370   : > { %v1161_v16 = vpop.permute.xlu0 %1160 }
 0x373   : > { %2466 = vmatmul.msk.bf16.gmra.mxu0 %vm1383_vm11, %v3630_v0  ;;  %v2632_v0 = vld [vmem:[%s4173_s8 + $0x4] sm:$0xf] }
 0x374   : > { %v2659_v1 = vld [vmem:[#allocation3 + $0xa4] sm:$0xf0]  ;;  %v2403_v56 = vld [vmem:[#allocation3 + $0xa8] sm:$0xf0]  ;;  %v2302_v34 = vor.u32 %v2632_v0, %v2299_v48 }
 0x375   : > { %v2402_v3 = vor.u32 %v2659_v1, %v2401_v63  ;;  %v2406_v44 = vor.u32 %v2658_v2, %v2403_v56 }
 0x377   : > { %1414 = vmatpush.bf16.msra.mxu1 %v2402_v3  ;;  %1471 = vmatpush.bf16.msrb.mxu2 %v2406_v44 }
 0x37b   : > { %1415 = vmatpush.bf16.msra.mxu1 %v2394_v15  ;;  %1472 = vmatpush.bf16.msrb.mxu2 %v2398_v20 }
 0x37f   : > { %1416 = vmatpush.bf16.msra.mxu1 %v2386_v28  ;;  %1473 = vmatpush.bf16.msrb.mxu2 %v2390_v29 }
 0x382   : > { %1417 = vmatmul.bf16.vlgmr.msra.gmra.mxu1 %v2302_v34  ;;  %1474 = vmatmul.bf16.vlgmr.msrb.gmra.mxu2 %v2302_v34 }
 0x392   : > { %1422 = vmatmul.bf16.gmra.mxu1 %v2314_v35  ;;  %1479 = vmatmul.bf16.gmra.mxu2 %v2314_v35 }
 0x3b7   : > { %v1437_v19 = vpop.f32.mrf.mxu2 }
 0x3bf   : > { %v1439_v30 = vpop.f32.mrf.mxu2 }
 0x3c0   : > { %v1399_v27 = vpop.f32.mrf.mxu0 }
 0x3c1   : > { %v1400_v40 = vadd.f32 %v1399_v27, %v1156_v39 }
 0x3c6   : > { %v1456_v33 = vpop.f32.mrf.mxu3 }
 0x3c7   : > { %v1442_v32 = vpop.f32.mrf.mxu2  ;;  %v1457_v37 = vadd.f32 %v1456_v33, %v1156_v39 }
 0x3c8   : > { %v1401_v43 = vpop.f32.mrf.mxu0 }
 0x3c9   : > { %v1402_v46 = vadd.f32 %v1401_v43, %v1161_v16 }
 0x3ce   : > { %v1458_v57 = vpop.f32.mrf.mxu3 }
 0x3cf   : > { %v1444_v38 = vpop.f32.mrf.mxu2  ;;  %v1459_v56 = vadd.f32 %v1458_v57, %v1161_v16 }
 0x3d0   : > { %v1404_v31 = vpop.f32.mrf.mxu0 }
 0x3d1   : > { %v1405_v15 = vadd.f32 %v1404_v31, %v1166_v10 }
 0x3d6   : > { %v1461_v11 = vpop.f32.mrf.mxu3 }
 0x3d7   : > { %v1462_v49 = vadd.f32 %v1461_v11, %v1166_v10 }
 0x3d8   : > { %v1406_v22 = vpop.f32.mrf.mxu0 }
 0x3d9   : > { %v1407_v35 = vadd.f32 %v1406_v22, %v1171_v26 }
 0x3e0   : > { %v1494_v42 = vpop.f32.mrf.mxu0 }
 0x3e8   : > { %v1496_v63 = vpop.f32.mrf.mxu0 }
 0x3f0   : > { %v1499_v48 = vpop.f32.mrf.mxu0 }
 0x3f8   : > { %v1501_v39 = vpop.f32.mrf.mxu0 }
 0x3ff   : > { %v1418_v41 = vpop.f32.mrf.mxu1 }
 0x400   : > { %v1419_v51 = vadd.f32 %v1418_v41, %v1400_v40 }
 0x402   : > { %v1438_v52 = vadd.f32 %v1437_v19, %v1419_v51  ;;  %v1463_v19 = vpop.f32.mrf.mxu3 }
 0x404   : > { %v3681_v55 = vmax.f32 %v1438_v52, 0.0 }
 0x405   : > { %v1475_v59 = vpop.f32.mrf.mxu2 }
 0x406   : > { %v1476_v17 = vadd.f32 %v1475_v59, %v1457_v37  ;;  %1592 = vrot.lane.b32.xlu1 %v3681_v55, %s2910_s17  ;;  %1632 = vrot.lane.b32.xlu2 %v3681_v55, %s2909_s20 }
 0x407   : > { %1760 = vrot.lane.b32.xlu0 %v3681_v55, %s2914_s24  ;;  %v1420_v60 = vpop.f32.mrf.mxu1 }
 0x408   : > { %v1495_v61 = vadd.f32 %v1494_v42, %v1476_v17  ;;  %v1421_v1 = vadd.f32 %v1420_v60, %v1402_v46 }
 0x40a   : > { %v3689_v2 = vmax.f32 %v1495_v61, 0.0  ;;  %v1440_v4 = vadd.f32 %v1439_v30, %v1421_v1 }
 0x40c   : > { %v1672_v3 = vpack.c.bf16 %v3689_v2, %v3681_v55  ;;  %v3699_v53 = vmax.f32 %v1440_v4, 0.0 }
 0x40d   : > { %v1477_v44 = vpop.f32.mrf.mxu2 }
 0x40e   : > { %1676 = vst [vmem:[#allocation3 + $0x80] sm:$0xff] %v1672_v3  ;;  %v1478_v5 = vadd.f32 %v1477_v44, %v1459_v56  ;;  %1680 = vrot.lane.b32.xlu1 %v3681_v55, %s4198_s30  ;;  %1720 = vrot.lane.b32.xlu2 %v3681_v55, %s4199_s12 }
 0x40f   : > { %1552 = vrot.lane.b32.xlu0 %v3681_v55, %s4200_s15  ;;  %v1423_v12 = vpop.f32.mrf.mxu1 }
 0x410   : > { %v1497_v20 = vadd.f32 %v1496_v63, %v1478_v5  ;;  %v1424_v21 = vadd.f32 %v1423_v12, %v1405_v15 }
 0x412   : > { %v3701_v0 = vmax.f32 %v1497_v20, 0.0  ;;  %v1443_v29 = vadd.f32 %v1442_v32, %v1424_v21  ;;  %v1464_v32 = vadd.f32 %v1463_v19, %v1171_v26  ;;  %v1881_v26 = vld [vmem:[%s4176_s11 + $0x8] sm:$0xff] }
 0x414   : > { %v1673_v18 = vpack.c.bf16 %v3701_v0, %v3699_v53  ;;  %v3711_v43 = vmax.f32 %v1443_v29, 0.0 }
 0x415   : > { %v1480_v28 = vpop.f32.mrf.mxu2 }
 0x416   : > { %1677 = vst [vmem:[#allocation3 + $0x88] sm:$0xff] %v1673_v18  ;;  %v1481_v34 = vadd.f32 %v1480_v28, %v1462_v49  ;;  %1634 = vrot.lane.b32.xlu1 %v3699_v53, %s2909_s20  ;;  %1762 = vrot.lane.b32.xlu2 %v3699_v53, %s2914_s24 }
 0x417   : > { %1594 = vrot.lane.b32.xlu0 %v3699_v53, %s2910_s17  ;;  %v1425_v45 = vpop.f32.mrf.mxu1 }
 0x418   : > { %v1500_v27 = vadd.f32 %v1499_v48, %v1481_v34  ;;  %v1426_v30 = vadd.f32 %v1425_v45, %v1407_v35 }
 0x41a   : > { %v3713_v31 = vmax.f32 %v1500_v27, 0.0  ;;  %v1445_v40 = vadd.f32 %v1444_v38, %v1426_v30 }
 0x41c   : > { %v1674_v33 = vpack.c.bf16 %v3713_v31, %v3711_v43  ;;  %v1510_v42 = vmax.f32 %v1445_v40, 0.0 }
 0x41d   : > { %v1482_v10 = vpop.f32.mrf.mxu2 }
 0x41e   : > { %1678 = vst [vmem:[#allocation3 + $0x90] sm:$0xff] %v1674_v33  ;;  %v1483_v41 = vadd.f32 %v1482_v10, %v1464_v32  ;;  %1722 = vrot.lane.b32.xlu1 %v3699_v53, %s4199_s12  ;;  %1554 = vrot.lane.b32.xlu2 %v3699_v53, %s4200_s15 }
 0x41f   : > { %1682 = vrot.lane.b32.xlu0 %v3699_v53, %s4198_s30 }
 0x420   : > { %v1502_v22 = vadd.f32 %v1501_v39, %v1483_v41 }
 0x422   : > { %v3723_v51 = vmax.f32 %v1502_v22, 0.0 }
 0x424   : > { %v1675_v52 = vpack.c.bf16 %v3723_v51, %v1510_v42 }
 0x426   : > { %1679 = vst [vmem:[#allocation3 + $0x98] sm:$0xff] %v1675_v52  ;;  %1636 = vrot.lane.b32.xlu1 %v3711_v43, %s2909_s20  ;;  %1764 = vrot.lane.b32.xlu2 %v3711_v43, %s2914_s24 }
 0x427   : > { %1596 = vrot.lane.b32.xlu0 %v3711_v43, %s2910_s17 }
 0x42e   : > { %1724 = vrot.lane.b32.xlu1 %v3711_v43, %s4199_s12  ;;  %1556 = vrot.lane.b32.xlu2 %v3711_v43, %s4200_s15 }
 0x42f   : > { %1684 = vrot.lane.b32.xlu0 %v3711_v43, %s4198_s30 }
 0x436   : > { %1766 = vrot.lane.b32.xlu1 %v1510_v42, %s2914_s24  ;;  %1516 = vrot.lane.b32.xlu2 %v3711_v43, %s4201_s16 }
 0x437   : > { %1638 = vrot.lane.b32.xlu0 %v1510_v42, %s2909_s20 }
 0x43e   : > { %1558 = vrot.lane.b32.xlu1 %v1510_v42, %s4200_s15  ;;  %1598 = vrot.lane.b32.xlu2 %v1510_v42, %s2910_s17 }
 0x43f   : > { %1726 = vrot.lane.b32.xlu0 %v1510_v42, %s4199_s12 }
 0x446   : > { %1768 = vrot.lane.b32.xlu1 %v3689_v2, %s2914_s24  ;;  %1686 = vrot.lane.b32.xlu2 %v1510_v42, %s4198_s30 }
 0x447   : > { %1640 = vrot.lane.b32.xlu0 %v3689_v2, %s2909_s20 }
 0x44e   : > { %1560 = vrot.lane.b32.xlu1 %v3689_v2, %s4200_s15  ;;  %1600 = vrot.lane.b32.xlu2 %v3689_v2, %s2910_s17 }
 0x44f   : > { %1728 = vrot.lane.b32.xlu0 %v3689_v2, %s4199_s12 }
 0x456   : > { %1602 = vrot.lane.b32.xlu1 %v3701_v0, %s2910_s17  ;;  %1688 = vrot.lane.b32.xlu2 %v3689_v2, %s4198_s30 }
 0x457   : > { %1770 = vrot.lane.b32.xlu0 %v3701_v0, %s2914_s24 }
 0x45e   : > { %1690 = vrot.lane.b32.xlu1 %v3701_v0, %s4198_s30  ;;  %1642 = vrot.lane.b32.xlu2 %v3701_v0, %s2909_s20 }
 0x45f   : > { %1562 = vrot.lane.b32.xlu0 %v3701_v0, %s4200_s15 }
 0x460   : > { %v3768_v38 = vpop.permute.xlu2 %1632 }
 0x466   : > { %1604 = vrot.lane.b32.xlu1 %v3713_v31, %s2910_s17  ;;  %1730 = vrot.lane.b32.xlu2 %v3701_v0, %s4199_s12 }
 0x467   : > { %1772 = vrot.lane.b32.xlu0 %v3713_v31, %s2914_s24 }
 0x468   : > { %v3776_v37 = vpop.permute.xlu2 %1720 }
 0x46e   : > { %1692 = vrot.lane.b32.xlu1 %v3713_v31, %s4198_s30  ;;  %1644 = vrot.lane.b32.xlu2 %v3713_v31, %s2909_s20 }
 0x46f   : > { %1564 = vrot.lane.b32.xlu0 %v3713_v31, %s4200_s15 }
 0x470   : > { %v3784_v57 = vpop.permute.xlu2 %1762 }
 0x476   : > { %1646 = vrot.lane.b32.xlu1 %v3723_v51, %s2909_s20  ;;  %1732 = vrot.lane.b32.xlu2 %v3713_v31, %s4199_s12  ;;  %s4202_s20 = smov 111  }
 0x477   : > { %1524 = vrot.lane.b32.xlu0 %v3713_v31, %s4201_s16 }
 0x478   : > { %v1593_v59 = vpop.permute.xlu1 %1592  ;;  %v3792_v17 = vpop.permute.xlu2 %1554 }
 0x479   : > { %v1761_v16 = vpop.permute.xlu0 %1760 }
 0x47e   : > { %1734 = vrot.lane.b32.xlu1 %v3723_v51, %s4199_s12  ;;  %1774 = vrot.lane.b32.xlu2 %v3723_v51, %s2914_s24  ;;  %s2713_s24 = sshll.u32 %s3009_s29, 5 }
 0x47f   : > { %1606 = vrot.lane.b32.xlu0 %v3723_v51, %s2910_s17  ;;  %s2194_s21 = scalar_lea.hbm %s4178_s13, %s2713_s24 }
 0x480   : > { %v1681_v60 = vpop.permute.xlu1 %1680  ;;  %v3800_v46 = vpop.permute.xlu2 %1764  ;;  %s2197_s12 = sshll.u32 %s2194_s21, 4  ;;  %s2198_s12 = int_to_ptr.hbm [resolvable:$true] %s2197_s12 }
 0x481   : > { %v3802_v61 = vpop.permute.xlu0 %1552 }
 0x486   : > { %1518 = vrot.lane.b32.xlu1 %v1510_v42, %s4201_s16  ;;  %1520 = vrot.lane.b32.xlu2 %v3689_v2, %s4201_s16 }
 0x487   : > { %1694 = vrot.lane.b32.xlu0 %v3723_v51, %s4198_s30 }
 0x488   : > { %v1635_v63 = vpop.permute.xlu1 %1634  ;;  %v3809_v1 = vpop.permute.xlu2 %1556 }
 0x489   : > { %v3811_v56 = vpop.permute.xlu0 %1594 }
 0x48e   : > { %1512 = vrot.lane.b32.xlu1 %v3681_v55, %s4201_s16  ;;  %1806 = vrot.lane.b32.xlu2 %v1510_v42, %s4202_s20 }
 0x48f   : > { %1514 = vrot.lane.b32.xlu0 %v3699_v53, %s4201_s16 }
 0x490   : > { %v3818_v3 = vpop.permute.xlu1 %1722  ;;  %v3820_v44 = vpop.permute.xlu2 %1516 }
 0x491   : > { %v3822_v4 = vpop.permute.xlu0 %1682 }
 0x496   : > { %1522 = vrot.lane.b32.xlu1 %v3701_v0, %s4201_s16  ;;  %1566 = vrot.lane.b32.xlu2 %v3723_v51, %s4200_s15 }
 0x497   : > { %1804 = vrot.lane.b32.xlu0 %v3711_v43, %s4202_s20 }
 0x498   : > { %v3830_v5 = vpop.permute.xlu1 %1636  ;;  %v3832_v11 = vpop.permute.xlu2 %1598 }
 0x499   : > { %v3834_v12 = vpop.permute.xlu0 %1596 }
 0x49e   : > { %1812 = vrot.lane.b32.xlu1 %v3713_v31, %s4202_s20  ;;  %1526 = vrot.lane.b32.xlu2 %v3723_v51, %s4201_s16  ;;  %s463_s16 = sand.u32 1, %s2893_s26  }
 0x49f   : > { %1814 = vrot.lane.b32.xlu0 %v3723_v51, %s4202_s20  ;;  %s2183_s29 = scalar_lea.sflag [#allocation6], %s463_s16 }
 0x4a0   : > { %v3842_v15 = vpop.permute.xlu1 %1724  ;;  %v3844_v20 = vpop.permute.xlu2 %1686 }
 0x4a1   : > { %v3846_v21 = vpop.permute.xlu0 %1684 }
 0x4a6   : > { %1802 = vrot.lane.b32.xlu1 %v3699_v53, %s4202_s20  ;;  %1800 = vrot.lane.b32.xlu2 %v3681_v55, %s4202_s20  ;;  %v1880_v55 = vld [vmem:[%s4176_s11] sm:$0xff] }
 0x4a7   : > { %1808 = vrot.lane.b32.xlu0 %v3689_v2, %s4202_s20 }
 0x4a8   : > { %v3854_v48 = vpop.permute.xlu1 %1766  ;;  %v1601_v49 = vpop.permute.xlu2 %1600 }
 0x4a9   : > { %v1608_v18 = vsel %vm855_vm5, %v1593_v59, %v1601_v49  ;;  %v1612_v28 = vsel %vm855_vm5, %v1601_v49, %v1593_v59  ;;  %v3860_v29 = vpop.permute.xlu0 %1638 }
 0x4aa   : > { %v1616_v34 = vmul.f32 %v1612_v28, %v3360_v6  ;;  %v1617_v53 = vmul.f32 %v1608_v18, %v3363_v7 }
 0x4ac   : > { %v1624_v2 = vpack.c.bf16 %v1617_v53, %v1616_v34 }
 0x4ae   : > { %1628 = vst [vmem:[#allocation3 + $0x40] sm:$0xff] %v1624_v2  ;;  %1884 = vperm.xlu1 %2779, %v1880_v55   ;;  %1810 = vrot.lane.b32.xlu2 %v3701_v0, %s4202_s20  ;;  %s2290_s20 = sshll.u32 %s463_s16, 5 }
 0x4af   : > { %1889 = vperm.xlu0 %2778, %v1881_v26   ;;  %s465_s17 = scalar_lea.vmem [#allocation7], %s2290_s20  ;;  %s2849_s20 = sshra.s32 %s2198_s12, 4  ;;  %s2850_s20 = int_to_ptr.hbm [resolvable:$true] %s2849_s20 }
 0x4b0   : > { %v3872_v45 = vpop.permute.xlu1 %1558  ;;  %v1689_v35 = vpop.permute.xlu2 %1688  ;;  %s2195_s30 = sshll.u32 %s465_s17, 4  ;;  %s2851_s0 = scalar_lea.hbm %s2850_s20, 32  ;;  %s2196_s30 = int_to_ptr.vmem [resolvable:$true] %s2195_s30 }
 0x4b1   : > { %v1696_v27 = vsel %vm949_vm12, %v1681_v60, %v1689_v35  ;;  %v1700_v19 = vsel %vm949_vm12, %v1689_v35, %v1681_v60  ;;  %v3878_v43 = vpop.permute.xlu0 %1726  ;;  %p2852_p0 = scmp.ne.s32.totalorder %s2850_s20, %s2851_s0  ;;  %p2856_p3 = scmp.lt.s32.totalorder %s2850_s20, %s4178_s13 }
 0x4b2   : > { %v1704_v30 = vmul.f32 %v1696_v27, %v3636_v8  ;;  %v1705_v31 = vmul.f32 %v1700_v19, %v3639_v9  ;;  %p2857_p4 = scmp.lt.s32.totalorder %s2855_s22, %s2851_s0 }
 0x4b3   : > { %p2853_p1 = pnand %p2852_p0, %p3026_p5 }
 0x4b4   : > { %v1712_v32 = vpack.c.bf16 %v1705_v31, %v1704_v30  ;;  %p2858_p7 = por %p2857_p4, %p2856_p3 }
 0x4b5   : > { %p2854_p2 = pneg %p2853_p1 }
 0x4b6   : > { %1716 = vst [vmem:[#allocation3 + $0xa0] sm:$0xff] %v1712_v32 }
 0x4b7   : > { %p2859_p8 = pnand %p2858_p7, %p2854_p2 }
 0x4b8   : > { %v1769_v33 = vpop.permute.xlu1 %1768  ;;  %v1643_v0 = vpop.permute.xlu2 %1642 }
 0x4b9   : > { %v1776_v10 = vsel %vm1035_vm9, %v1761_v16, %v1769_v33  ;;  %v1780_v39 = vsel %vm1035_vm9, %v1769_v33, %v1761_v16  ;;  %v1649_v40 = vsel %vm898_vm4, %v1635_v63, %v1643_v0  ;;  %v1653_v41 = vsel %vm898_vm4, %v1643_v0, %v1635_v63  ;;  %v1641_v22 = vpop.permute.xlu0 %1640 }
 0x4ba   : > { %v1784_v42 = vmul.f32 %v1776_v10, %v3530_v54  ;;  %v1785_v51 = vmul.f32 %v1780_v39, %v3533_v36  ;;  %v1658_v52 = vmul.f32 %v1653_v41, %v3307_v50  ;;  %v1659_v59 = vmul.f32 %v1649_v40, %v3310_v24 }
 0x4bb   : > { %v1648_v60 = vsel %vm898_vm4, %v3768_v38, %v1641_v22  ;;  %v1652_v16 = vsel %vm898_vm4, %v1641_v22, %v3768_v38 }
 0x4bc   : > { %v1792_v49 = vpack.c.bf16 %v1785_v51, %v1784_v42  ;;  %v1665_v18 = vpack.c.bf16 %v1659_v59, %v1658_v52  ;;  %v1656_v63 = vmul.f32 %v1652_v16, %v3307_v50  ;;  %v1657_v28 = vmul.f32 %v1648_v60, %v3310_v24 }
 0x4be   : > { %1796 = vst [vmem:[#allocation3 + $0xe0] sm:$0xff] %v1792_v49  ;;  %v1664_v34 = vpack.c.bf16 %v1657_v28, %v1656_v63 }
 0x4bf   : > { %1669 = vst [vmem:[#allocation3 + $0x68] sm:$0xff] %v1665_v18 }
 0x4c0   : > { %1668 = vst [vmem:[#allocation3 + $0x60] sm:$0xff] %v1664_v34  ;;  %v1561_v53 = vpop.permute.xlu1 %1560  ;;  %v1731_v55 = vpop.permute.xlu2 %1730 }
 0x4c1   : > { %v1568_v2 = vsel %vm812_vm6, %v3802_v61, %v1561_v53  ;;  %v1572_v38 = vsel %vm812_vm6, %v1561_v53, %v3802_v61  ;;  %v1737_v26 = vsel %vm992_vm10, %v3818_v3, %v1731_v55  ;;  %v1741_v35 = vsel %vm992_vm10, %v1731_v55, %v3818_v3  ;;  %v1729_v27 = vpop.permute.xlu0 %1728 }
 0x4c2   : > { %v1576_v19 = vmul.f32 %v1572_v38, %v3419_v23  ;;  %v1577_v30 = vmul.f32 %v1568_v2, %v3422_v62  ;;  %v1746_v31 = vmul.f32 %v1737_v26, %v3573_v58  ;;  %v1747_v32 = vmul.f32 %v1741_v35, %v3582_v14 }
 0x4c3   : > { %v1736_v61 = vsel %vm992_vm10, %v3776_v37, %v1729_v27  ;;  %v1740_v33 = vsel %vm992_vm10, %v1729_v27, %v3776_v37 }
 0x4c4   : > { %v1584_v0 = vpack.c.bf16 %v1577_v30, %v1576_v19  ;;  %v1753_v10 = vpack.c.bf16 %v1747_v32, %v1746_v31  ;;  %v1744_v3 = vmul.f32 %v1736_v61, %v3573_v58  ;;  %v1745_v39 = vmul.f32 %v1740_v33, %v3582_v14 }
 0x4c6   : > { %1588 = vst [vmem:[#allocation3 + $0x20] sm:$0xff] %v1584_v0  ;;  %v1752_v40 = vpack.c.bf16 %v1745_v39, %v1744_v3 }
 0x4c7   : > { %1757 = vst [vmem:[#allocation3 + $0xc8] sm:$0xff] %v1753_v10 }
 0x4c8   : > { %1756 = vst [vmem:[#allocation3 + $0xc0] sm:$0xff] %v1752_v40  ;;  %v1603_v41 = vpop.permute.xlu1 %1602  ;;  %v1645_v22 = vpop.permute.xlu2 %1644 }
 0x4c9   : > { %v1609_v42 = vsel %vm855_vm5, %v3811_v56, %v1603_v41  ;;  %v1613_v37 = vsel %vm855_vm5, %v1603_v41, %v3811_v56  ;;  %v1650_v51 = vsel %vm898_vm4, %v3830_v5, %v1645_v22  ;;  %v1654_v52 = vsel %vm898_vm4, %v1645_v22, %v3830_v5  ;;  %v1771_v59 = vpop.permute.xlu0 %1770 }
 0x4ca   : > { %v1618_v60 = vmul.f32 %v1613_v37, %v3360_v6  ;;  %v1619_v16 = vmul.f32 %v1609_v42, %v3363_v7  ;;  %v1660_v49 = vmul.f32 %v1654_v52, %v3307_v50  ;;  %v1661_v18 = vmul.f32 %v1650_v51, %v3310_v24 }
 0x4cb   : > { %v1777_v56 = vsel %vm1035_vm9, %v3784_v57, %v1771_v59  ;;  %v1781_v63 = vsel %vm1035_vm9, %v1771_v59, %v3784_v57 }
 0x4cc   : > { %v1625_v28 = vpack.c.bf16 %v1619_v16, %v1618_v60  ;;  %v1666_v34 = vpack.c.bf16 %v1661_v18, %v1660_v49  ;;  %v1786_v5 = vmul.f32 %v1777_v56, %v3530_v54  ;;  %v1787_v53 = vmul.f32 %v1781_v63, %v3533_v36 }
 0x4ce   : > { %1629 = vst [vmem:[#allocation3 + $0x48] sm:$0xff] %v1625_v28  ;;  %v1793_v55 = vpack.c.bf16 %v1787_v53, %v1786_v5 }
 0x4cf   : > { %1670 = vst [vmem:[#allocation3 + $0x70] sm:$0xff] %v1666_v34 }
 0x4d0   : > { %1797 = vst [vmem:[#allocation3 + $0xe8] sm:$0xff] %v1793_v55  ;;  %v1691_v2 = vpop.permute.xlu1 %1690  ;;  %v1733_v38 = vpop.permute.xlu2 %1732 }
 0x4d1   : > { %v1697_v26 = vsel %vm949_vm12, %v3822_v4, %v1691_v2  ;;  %v1701_v57 = vsel %vm949_vm12, %v1691_v2, %v3822_v4  ;;  %v1738_v35 = vsel %vm992_vm10, %v3842_v15, %v1733_v38  ;;  %v1742_v27 = vsel %vm992_vm10, %v1733_v38, %v3842_v15  ;;  %v1563_v19 = vpop.permute.xlu0 %1562 }
 0x4d2   : > { %v1706_v30 = vmul.f32 %v1697_v26, %v3636_v8  ;;  %v1707_v31 = vmul.f32 %v1701_v57, %v3639_v9  ;;  %v1748_v32 = vmul.f32 %v1738_v35, %v3573_v58  ;;  %v1749_v61 = vmul.f32 %v1742_v27, %v3582_v14 }
 0x4d3   : > { %v1569_v4 = vsel %vm812_vm6, %v3792_v17, %v1563_v19  ;;  %v1573_v33 = vsel %vm812_vm6, %v1563_v19, %v3792_v17 }
 0x4d4   : > { %v1713_v0 = vpack.c.bf16 %v1707_v31, %v1706_v30  ;;  %v1754_v10 = vpack.c.bf16 %v1749_v61, %v1748_v32  ;;  %v1578_v15 = vmul.f32 %v1573_v33, %v3419_v23  ;;  %v1579_v3 = vmul.f32 %v1569_v4, %v3422_v62 }
 0x4d6   : > { %1717 = vst [vmem:[#allocation3 + $0xa8] sm:$0xff] %v1713_v0  ;;  %v1585_v39 = vpack.c.bf16 %v1579_v3, %v1578_v15 }
 0x4d7   : > { %1758 = vst [vmem:[#allocation3 + $0xd0] sm:$0xff] %v1754_v10  ;;  %v2706_v33 = vld [vmem:[#allocation3 + $0xe4] sm:$0xf0] }
 0x4d8   : > { %1589 = vst [vmem:[#allocation3 + $0x28] sm:$0xff] %v1585_v39  ;;  %v1605_v40 = vpop.permute.xlu1 %1604  ;;  %v1775_v41 = vpop.permute.xlu2 %1774 }
 0x4d9   : > { %v1610_v22 = vsel %vm855_vm5, %v3834_v12, %v1605_v40  ;;  %v1614_v17 = vsel %vm855_vm5, %v1605_v40, %v3834_v12  ;;  %v1779_v42 = vsel %vm1035_vm9, %v3854_v48, %v1775_v41  ;;  %v1783_v37 = vsel %vm1035_vm9, %v1775_v41, %v3854_v48  ;;  %v1773_v51 = vpop.permute.xlu0 %1772 }
 0x4da   : > { %v1620_v52 = vmul.f32 %v1614_v17, %v3360_v6  ;;  %v1621_v59 = vmul.f32 %v1610_v22, %v3363_v7  ;;  %v1790_v60 = vmul.f32 %v1779_v42, %v3530_v54  ;;  %v1791_v16 = vmul.f32 %v1783_v37, %v3533_v36 }
 0x4db   : > { %v1778_v12 = vsel %vm1035_vm9, %v3800_v46, %v1773_v51  ;;  %v1782_v49 = vsel %vm1035_vm9, %v1773_v51, %v3800_v46 }
 0x4dc   : > { %v1626_v18 = vpack.c.bf16 %v1621_v59, %v1620_v52  ;;  %v1795_v56 = vpack.c.bf16 %v1791_v16, %v1790_v60  ;;  %v1788_v48 = vmul.f32 %v1778_v12, %v3530_v54  ;;  %v1789_v63 = vmul.f32 %v1782_v49, %v3533_v36 }
 0x4de   : > { %1630 = vst [vmem:[#allocation3 + $0x50] sm:$0xff] %v1626_v18  ;;  %v1794_v28 = vpack.c.bf16 %v1789_v63, %v1788_v48  ;;  %v2537_v48 = vld [vmem:[#allocation3 + $0x70] sm:$0xf]  ;;  %v2531_v63 = vld [vmem:[#allocation3 + $0x68] sm:$0xf0] }
 0x4df   : > { %1799 = vst [vmem:[#allocation3 + $0xf8] sm:$0xff] %v1795_v56 }
 0x4e0   : > { %1798 = vst [vmem:[#allocation3 + $0xf0] sm:$0xff] %v1794_v28  ;;  %v1693_v34 = vpop.permute.xlu1 %1692  ;;  %v3998_v5 = vpop.permute.xlu2 %1520  ;;  %v2691_v28 = vld [vmem:[#allocation3 + $0x74] sm:$0xf] }
 0x4e1   : > { %v1698_v53 = vsel %vm949_vm12, %v3846_v21, %v1693_v34  ;;  %v1702_v46 = vsel %vm949_vm12, %v1693_v34, %v3846_v21  ;;  %v1565_v55 = vpop.permute.xlu0 %1564 }
 0x4e2   : > { %v1708_v54 = vmul.f32 %v1698_v53, %v3636_v8  ;;  %v1709_v36 = vmul.f32 %v1702_v46, %v3639_v9  ;;  %v1570_v2 = vsel %vm812_vm6, %v3809_v1, %v1565_v55  ;;  %v1574_v38 = vsel %vm812_vm6, %v1565_v55, %v3809_v1  ;;  %v2529_v55 = vld [vmem:[#allocation3 + $0x60] sm:$0xf] }
 0x4e3   : > { %v1580_v26 = vmul.f32 %v1574_v38, %v3419_v23  ;;  %v1581_v57 = vmul.f32 %v1570_v2, %v3422_v62 }
 0x4e4   : > { %v1714_v35 = vpack.c.bf16 %v1709_v36, %v1708_v54  ;;  %v2689_v54 = vld [vmem:[#allocation3 + $0x64] sm:$0xf] }
 0x4e5   : > { %v1586_v27 = vpack.c.bf16 %v1581_v57, %v1580_v26  ;;  %v2534_v26 = vor.u32 %v2689_v54, %v2531_v63  ;;  %v2497_v54 = vld [vmem:[#allocation3 + $0x20] sm:$0xf] }
 0x4e6   : > { %1718 = vst [vmem:[#allocation3 + $0xb0] sm:$0xff] %v1714_v35  ;;  %v2708_v21 = vld [vmem:[#allocation3 + $0xf4] sm:$0xf0] }
 0x4e7   : > { %1590 = vst [vmem:[#allocation3 + $0x30] sm:$0xff] %v1586_v27  ;;  %v2601_v19 = vld [vmem:[#allocation3 + $0xf0] sm:$0xf] }
 0x4e8   : > { %v1647_v30 = vpop.permute.xlu1 %1646  ;;  %v4016_v31 = vpop.permute.xlu2 %1806  ;;  %v2602_v32 = vor.u32 %v2708_v21, %v2601_v19 }
 0x4e9   : > { %v1651_v61 = vsel %vm898_vm4, %v3860_v29, %v1647_v30  ;;  %v1655_v1 = vsel %vm898_vm4, %v1647_v30, %v3860_v29  ;;  %v1525_v4 = vpop.permute.xlu0 %1524  ;;  %v2593_v29 = vld [vmem:[#allocation3 + $0xe0] sm:$0xf] }
 0x4ea   : > { %v1662_v0 = vmul.f32 %v1655_v1, %v3307_v50  ;;  %v1663_v10 = vmul.f32 %v1651_v61, %v3310_v24  ;;  %2104 = vmatpush.bf16.msrb.mxu3 %v2602_v32  ;;  %v1530_v15 = vsel %vm769_vm8, %v3820_v44, %v1525_v4  ;;  %v1534_v3 = vsel %vm769_vm8, %v1525_v4, %v3820_v44  ;;  %v2585_v1 = vld [vmem:[#allocation3 + $0xd0] sm:$0xf] }
 0x4eb   : > { %v1540_v39 = vmul.f32 %v1534_v3, %v3509_v25  ;;  %v1541_v40 = vmul.f32 %v1530_v15, %v3512_v13  ;;  %v2594_v22 = vor.u32 %v2706_v33, %v2593_v29  ;;  %v2577_v33 = vld [vmem:[#allocation3 + $0xc0] sm:$0xf]  ;;  %v2687_v3 = vld [vmem:[#allocation3 + $0x54] sm:$0xf] }
 0x4ec   : > { %v1667_v41 = vpack.c.bf16 %v1663_v10, %v1662_v0  ;;  %v2702_v0 = vld [vmem:[#allocation3 + $0xc4] sm:$0xf0]  ;;  %v2521_v10 = vld [vmem:[#allocation3 + $0x50] sm:$0xf] }
 0x4ed   : > { %v1546_v17 = vpack.c.bf16 %v1541_v40, %v1540_v39 }
 0x4ee   : > { %1671 = vst [vmem:[#allocation3 + $0x78] sm:$0xff] %v1667_v41  ;;  %2105 = vmatpush.bf16.msrb.mxu3 %v2594_v22 }
 0x4ef   : > { %1550 = vst [vmem:[#allocation3 + $0x10] sm:$0xff] %v1546_v17  ;;  %v2686_v17 = vld [vmem:[#allocation3 + $0x44] sm:$0xf0] }
 0x4f0   : > { %v1735_v50 = vpop.permute.xlu1 %1734  ;;  %v1567_v24 = vpop.permute.xlu2 %1566 }
 0x4f1   : > { %v1739_v42 = vsel %vm992_vm10, %v3878_v43, %v1735_v50  ;;  %v1743_v44 = vsel %vm992_vm10, %v1735_v50, %v3878_v43  ;;  %v1571_v37 = vsel %vm812_vm6, %v3872_v45, %v1567_v24  ;;  %v1575_v51 = vsel %vm812_vm6, %v1567_v24, %v3872_v45  ;;  %v1607_v52 = vpop.permute.xlu0 %1606  ;;  %v2515_v50 = vld [vmem:[#allocation3 + $0x48] sm:$0xf0] }
 0x4f2   : > { %v1750_v59 = vmul.f32 %v1739_v42, %v3573_v58  ;;  %v1751_v60 = vmul.f32 %v1743_v44, %v3582_v14  ;;  %v1582_v16 = vmul.f32 %v1575_v51, %v3419_v23  ;;  %v1583_v12 = vmul.f32 %v1571_v37, %v3422_v62  ;;  %v2690_v14 = vld [vmem:[#allocation3 + $0x64] sm:$0xf0]  ;;  %v2513_v37 = vld [vmem:[#allocation3 + $0x40] sm:$0xf]  ;;  %v2685_v51 = vld [vmem:[#allocation3 + $0x44] sm:$0xf] }
 0x4f3   : > { %v1611_v43 = vsel %vm855_vm5, %v3832_v11, %v1607_v52  ;;  %v1615_v49 = vsel %vm855_vm5, %v1607_v52, %v3832_v11  ;;  %v2530_v38 = vor.u32 %v2690_v14, %v2529_v55  ;;  %v2578_v44 = vor.u32 %v2702_v0, %v2577_v33  ;;  %v2698_v14 = vld [vmem:[#allocation3 + $0xa4] sm:$0xf0]  ;;  %v2561_v55 = vld [vmem:[#allocation3 + $0xa0] sm:$0xf]  ;;  %v2674_v0 = vld [vmem:[%s4175_s10 + $0x4] sm:$0xf] }
 0x4f4   : > { %v1755_v18 = vpack.c.bf16 %v1751_v60, %v1750_v59  ;;  %v1587_v56 = vpack.c.bf16 %v1583_v12, %v1582_v16  ;;  %v1622_v45 = vmul.f32 %v1615_v49, %v3360_v6  ;;  %v1623_v58 = vmul.f32 %v1611_v43, %v3363_v7  ;;  %v2505_v49 = vld [vmem:[#allocation3 + $0x30] sm:$0xf] }
 0x4f5   : > { %v2692_v23 = vld [vmem:[#allocation3 + $0x74] sm:$0xf0]  ;;  %v2539_v62 = vld [vmem:[#allocation3 + $0x78] sm:$0xf0]  ;;  %v2514_v59 = vor.u32 %v2686_v17, %v2513_v37  ;;  %v2518_v60 = vor.u32 %v2685_v51, %v2515_v50  ;;  %v2469_v37 = vld [vmem:[%s4175_s10] sm:$0xf] }
 0x4f6   : > { %1759 = vst [vmem:[#allocation3 + $0xd8] sm:$0xff] %v1755_v18  ;;  %v1627_v34 = vpack.c.bf16 %v1623_v58, %v1622_v45  ;;  %v2538_v53 = vor.u32 %v2692_v23, %v2537_v48  ;;  %v2542_v46 = vor.u32 %v2691_v28, %v2539_v62  ;;  %v2682_v62 = vld [vmem:[#allocation3 + $0x24] sm:$0xf0]  ;;  %v2603_v17 = vld [vmem:[#allocation3 + $0xf8] sm:$0xf0] }
 0x4f7   : > { %1591 = vst [vmem:[#allocation3 + $0x38] sm:$0xff] %v1587_v56  ;;  %v2683_v56 = vld [vmem:[#allocation3 + $0x34] sm:$0xf]  ;;  %v2675_v51 = vld [vmem:[%s4175_s10 + $0x8] sm:$0xf0] }
 0x4f8   : > { %1631 = vst [vmem:[#allocation3 + $0x58] sm:$0xff] %v1627_v34  ;;  %v1519_v11 = vpop.permute.xlu1 %1518  ;;  %v1527_v36 = vpop.permute.xlu2 %1526  ;;  %2090 = vmatpush.bf16.msrb.mxu1 %v2538_v53  ;;  %2132 = vmatpush.bf16.msra.mxu0 %v2542_v46  ;;  %v2499_v34 = vld [vmem:[#allocation3 + $0x28] sm:$0xf0] }
 0x4f9   : > { %v1531_v6 = vsel %vm769_vm8, %v1519_v11, %v1527_v36  ;;  %v1535_v7 = vsel %vm769_vm8, %v1527_v36, %v1519_v11  ;;  %v1695_v2 = vpop.permute.xlu0 %1694  ;;  %v2562_v11 = vor.u32 %v2698_v14, %v2561_v55  ;;  %v2681_v36 = vld [vmem:[#allocation3 + $0x24] sm:$0xf] }
 0x4fa   : > { %v1542_v57 = vmul.f32 %v1535_v7, %v3509_v25  ;;  %v1543_v35 = vmul.f32 %v1531_v6, %v3512_v13  ;;  %v1699_v27 = vsel %vm949_vm12, %v3844_v20, %v1695_v2  ;;  %v1703_v21 = vsel %vm949_vm12, %v1695_v2, %v3844_v20 }
 0x4fb   : > { %v1710_v19 = vmul.f32 %v1699_v27, %v3636_v8  ;;  %v1711_v30 = vmul.f32 %v1703_v21, %v3639_v9  ;;  %v2498_v7 = vor.u32 %v2682_v62, %v2497_v54  ;;  %v2502_v2 = vor.u32 %v2681_v36, %v2499_v34  ;;  %v2489_v27 = vld [vmem:[#allocation3 + $0x10] sm:$0xf]  ;;  %v2679_v21 = vld [vmem:[#allocation3 + $0x14] sm:$0xf]  ;;  %v2705_v62 = vld [vmem:[#allocation3 + $0xe4] sm:$0xf] }
 0x4fc   : > { %v1547_v32 = vpack.c.bf16 %v1543_v35, %v1542_v57  ;;  %2091 = vmatpush.bf16.msrb.mxu1 %v2530_v38  ;;  %2133 = vmatpush.bf16.msra.mxu0 %v2534_v26  ;;  %v2696_v38 = vld [vmem:[#allocation3 + $0x94] sm:$0xf0] }
 0x4fd   : > { %v1715_v61 = vpack.c.bf16 %v1711_v30, %v1710_v19  ;;  %v2704_v4 = vld [vmem:[#allocation3 + $0xd4] sm:$0xf0]  ;;  %v2587_v54 = vld [vmem:[#allocation3 + $0xd8] sm:$0xf0] }
 0x4fe   : > { %1551 = vst [vmem:[#allocation3 + $0x18] sm:$0xff] %v1547_v32  ;;  %v2586_v15 = vor.u32 %v2704_v4, %v2585_v1  ;;  %v2684_v16 = vld [vmem:[#allocation3 + $0x34] sm:$0xf0]  ;;  %v2507_v12 = vld [vmem:[#allocation3 + $0x38] sm:$0xf0] }
 0x4ff   : > { %1719 = vst [vmem:[#allocation3 + $0xb8] sm:$0xff] %v1715_v61  ;;  %v2688_v39 = vld [vmem:[#allocation3 + $0x54] sm:$0xf0]  ;;  %v2523_v40 = vld [vmem:[#allocation3 + $0x58] sm:$0xf0]  ;;  %v2506_v58 = vor.u32 %v2684_v16, %v2505_v49  ;;  %v2510_v48 = vor.u32 %v2683_v56, %v2507_v12 }
 0x500   : > { %v1513_v20 = vpop.permute.xlu1 %1512  ;;  %v2522_v29 = vor.u32 %v2688_v39, %v2521_v10  ;;  %2106 = vmatpush.bf16.msrb.mxu3 %v2586_v15  ;;  %v2526_v8 = vor.u32 %v2687_v3, %v2523_v40  ;;  %v1801_v35 = vpop.permute.xlu2 %1800  ;;  %v2694_v61 = vld [vmem:[#allocation3 + $0x84] sm:$0xf0]  ;;  %v2471_v10 = vld [vmem:[%s4175_s10 + $0xc] sm:$0xf0]  ;;  %v2804_v39 = vld [vmem:[#allocation4 + $0x18] ss:$0 sm:$0xff] }
 0x501   : > { %v1528_v9 = vsel %vm769_vm8, %v1513_v20, %v3998_v5  ;;  %v1532_v41 = vsel %vm769_vm8, %v3998_v5, %v1513_v20  ;;  %v1515_v22 = vpop.permute.xlu0 %1514  ;;  %v2569_v5 = vld [vmem:[#allocation3 + $0xb0] sm:$0xf]  ;;  %v2595_v56 = vld [vmem:[#allocation3 + $0xe8] sm:$0xf0] }
 0x502   : > { %v1536_v24 = vmul.f32 %v1532_v41, %v3509_v25  ;;  %v1537_v42 = vmul.f32 %v1528_v9, %v3512_v13  ;;  %2092 = vmatpush.bf16.msrb.mxu1 %v2522_v29  ;;  %2134 = vmatpush.bf16.msra.mxu0 %v2526_v8  ;;  %v2803_v15 = vld [vmem:[#allocation4 + $0x10] ss:$0 sm:$0xff]  ;;  %v2545_v29 = vld [vmem:[#allocation3 + $0x80] sm:$0xf] }
 0x503   : > { %v2546_v41 = vor.u32 %v2694_v61, %v2545_v29  ;;  %v2695_v29 = vld [vmem:[#allocation3 + $0x94] sm:$0xf] }
 0x504   : > { %v1544_v52 = vpack.c.bf16 %v1537_v42, %v1536_v24  ;;  %2107 = vmatpush.bf16.msrb.mxu3 %v2578_v44  ;;  %v4102_v42 = vor.u32 %v2674_v0, %v2471_v10  ;;  %v2699_v0 = vld [vmem:[#allocation3 + $0xb4] sm:$0xf] }
 0x505   : > { %v2680_v26 = vld [vmem:[#allocation3 + $0x14] sm:$0xf0]  ;;  %v2491_v57 = vld [vmem:[#allocation3 + $0x18] sm:$0xf0] }
 0x506   : > { %1548 = vst [vmem:[#allocation3] sm:$0xff] %v1544_v52  ;;  %2093 = vmatpush.bf16.msrb.mxu1 %v2514_v59  ;;  %2135 = vmatpush.bf16.msra.mxu0 %v2518_v60  ;;  %v2700_v43 = vld [vmem:[#allocation3 + $0xb4] sm:$0xf0]  ;;  %v2490_v30 = vor.u32 %v2680_v26, %v2489_v27  ;;  %v2494_v32 = vor.u32 %v2679_v21, %v2491_v57  ;;  %v2477_v21 = vld [vmem:[%s4175_s10 + $0x8] sm:$0xf] }
 0x507   : > { %v2570_v18 = vor.u32 %v2700_v43, %v2569_v5  ;;  %v2470_v43 = vor.u32 %v2675_v51, %v2469_v37 }
 0x508   : > { %v1523_v45 = vpop.permute.xlu1 %1522  ;;  %v1811_v49 = vpop.permute.xlu2 %1810 }
 0x509   : > { %v1529_v63 = vsel %vm769_vm8, %v1515_v22, %v1523_v45  ;;  %v1533_v23 = vsel %vm769_vm8, %v1523_v45, %v1515_v22  ;;  %2108 = vmatpush.bf16.msrb.mxu3 %v2570_v18  ;;  %v1805_v28 = vpop.permute.xlu0 %1804  ;;  %v2707_v22 = vld [vmem:[#allocation3 + $0xf4] sm:$0xf] }
 0x50a   : > { %v1538_v53 = vmul.f32 %v1533_v23, %v3509_v25  ;;  %v1539_v46 = vmul.f32 %v1529_v63, %v3512_v13  ;;  %2094 = vmatpush.bf16.msrb.mxu1 %v2506_v58  ;;  %2136 = vmatpush.bf16.msra.mxu0 %v2510_v48  ;;  %v2553_v25 = vld [vmem:[#allocation3 + $0x90] sm:$0xf]  ;;  %v2606_v5 = vor.u32 %v2707_v22, %v2603_v17 }
 0x50b   : > { %v2554_v13 = vor.u32 %v2696_v38, %v2553_v25  ;;  %v2579_v25 = vld [vmem:[#allocation3 + $0xc8] sm:$0xf0] }
 0x50c   : > { %v1545_v6 = vpack.c.bf16 %v1539_v46, %v1538_v53  ;;  %v2598_v46 = vor.u32 %v2705_v62, %v2595_v56 }
 0x50d   : > { %2109 = vmatpush.bf16.msrb.mxu3 %v2562_v11  ;;  %v2481_v44 = vld [vmem:[#allocation3] sm:$0xf] }
 0x50e   : > { %1549 = vst [vmem:[#allocation3 + $0x8] sm:$0xff] %v1545_v6  ;;  %2095 = vmatpush.bf16.msrb.mxu1 %v2498_v7  ;;  %2137 = vmatpush.bf16.msra.mxu0 %v2502_v2  ;;  %v2703_v7 = vld [vmem:[#allocation3 + $0xd4] sm:$0xf] }
 0x50f   : > { %v2590_v26 = vor.u32 %v2703_v7, %v2587_v54 }
 0x510   : > { %v1813_v19 = vpop.permute.xlu1 %1812 }
 0x511   : > { %v1818_v1 = vsel %vm1078_vm7, %v1805_v28, %v1813_v19  ;;  %v1822_v4 = vsel %vm1078_vm7, %v1813_v19, %v1805_v28  ;;  %2110 = vmatpush.bf16.msrb.mxu3 %v2554_v13  ;;  %v1815_v33 = vpop.permute.xlu0 %1814  ;;  %v2571_v13 = vld [vmem:[#allocation3 + $0xb8] sm:$0xf0] }
 0x512   : > { %v1828_v3 = vmul.f32 %v2803_v15, %v1818_v1  ;;  %v1829_v40 = vmul.f32 %v2804_v39, %v1822_v4  ;;  %2096 = vmatpush.bf16.msrb.mxu1 %v2490_v30  ;;  %2138 = vmatpush.bf16.msra.mxu0 %v2494_v32  ;;  %v1819_v20 = vsel %vm1078_vm7, %v4016_v31, %v1815_v33  ;;  %v2676_v32 = vld [vmem:[%s4175_s10 + $0x10] sm:$0xf0] }
 0x513   : > { %v1823_v8 = vsel %vm1078_vm7, %v1815_v33, %v4016_v31  ;;  %v1830_v9 = vmul.f32 %v2803_v15, %v1819_v20  ;;  %v2677_v31 = vld [vmem:[#allocation3 + $0x4] sm:$0xf]  ;;  %v2574_v10 = vor.u32 %v2699_v0, %v2571_v13  ;;  %v2555_v20 = vld [vmem:[#allocation3 + $0x98] sm:$0xf0] }
 0x514   : > { %v1834_v50 = vpack.c.bf16 %v1829_v40, %v1828_v3  ;;  %v1831_v24 = vmul.f32 %v2804_v39, %v1823_v8  ;;  %v2563_v3 = vld [vmem:[#allocation3 + $0xa8] sm:$0xf0]  ;;  %v2558_v8 = vor.u32 %v2695_v29, %v2555_v20 }
 0x515   : > { %2111 = vmatpush.bf16.msrb.mxu3 %v2546_v41  ;;  %v2678_v52 = vld [vmem:[#allocation3 + $0x4] sm:$0xf0]  ;;  %v2483_v59 = vld [vmem:[#allocation3 + $0x8] sm:$0xf0]  ;;  %v2693_v41 = vld [vmem:[#allocation3 + $0x84] sm:$0xf] }
 0x516   : > { %1838 = vst [vmem:[#allocation3 + $0x110] sm:$0xff] %v1834_v50  ;;  %v1835_v60 = vpack.c.bf16 %v1831_v24, %v1830_v9  ;;  %v2482_v16 = vor.u32 %v2678_v52, %v2481_v44  ;;  %v2486_v12 = vor.u32 %v2677_v31, %v2483_v59  ;;  %v2547_v9 = vld [vmem:[#allocation3 + $0x88] sm:$0xf0] }
 0x517   : > { %v2550_v22 = vor.u32 %v2693_v41, %v2547_v9 }
 0x518   : > { %1839 = vst [vmem:[#allocation3 + $0x118] sm:$0xff] %v1835_v60  ;;  %2112 = vmatmul.bf16.vlgmr.msrb.gmra.mxu3 %v4102_v42  ;;  %v1803_v18 = vpop.permute.xlu1 %1802  ;;  %2097 = vmatpush.bf16.msrb.mxu1 %v2482_v16 }
 0x519   : > { %v1817_v45 = vsel %vm1078_vm7, %v1803_v18, %v1811_v49  ;;  %v1821_v58 = vsel %vm1078_vm7, %v1811_v49, %v1803_v18  ;;  %2139 = vmatpush.bf16.msra.mxu0 %v2486_v12  ;;  %v1809_v48 = vpop.permute.xlu0 %1808 }
 0x51a   : > { %v1826_v14 = vmul.f32 %v2803_v15, %v1817_v45  ;;  %v1827_v63 = vmul.f32 %v2804_v39, %v1821_v58  ;;  %v1816_v23 = vsel %vm1078_vm7, %v1801_v35, %v1809_v48  ;;  %v1820_v28 = vsel %vm1078_vm7, %v1809_v48, %v1801_v35  ;;  %v2701_v35 = vld [vmem:[#allocation3 + $0xc4] sm:$0xf] }
 0x51b   : > { %v1824_v34 = vmul.f32 %v2803_v15, %v1816_v23  ;;  %v1825_v53 = vmul.f32 %v2804_v39, %v1820_v28  ;;  %2098 = vmatmul.bf16.vlgmr.msrb.gmra.mxu1 %v2470_v43  ;;  %v2582_v27 = vor.u32 %v2701_v35, %v2579_v25  ;;  %v2478_v15 = vor.u32 %v2676_v32, %v2477_v21  ;;  %v2697_v39 = vld [vmem:[#allocation3 + $0xa4] sm:$0xf] }
 0x51c   : > { %2146 = vmatpush.bf16.msra.mxu1 %v2606_v5  ;;  %v1833_v55 = vpack.c.bf16 %v1827_v63, %v1826_v14  ;;  %2140 = vmatmul.bf16.vlgmr.msra.gmra.mxu0 %v2470_v43  ;;  %v2566_v40 = vor.u32 %v2697_v39, %v2563_v3 }
 0x51d   : > { %v1832_v11 = vpack.c.bf16 %v1825_v53, %v1824_v34  ;;  %v2617_v36 = vld [vmem:[#allocation3 + $0x110] sm:$0xf]  ;;  %v2711_v6 = vld [vmem:[#allocation3 + $0x114] sm:$0xf] }
 0x51e   : > { %1837 = vst [vmem:[#allocation3 + $0x108] sm:$0xff] %v1833_v55 }
 0x51f   : > { %1836 = vst [vmem:[#allocation3 + $0x100] sm:$0xff] %v1832_v11  ;;  %v2712_v2 = vld [vmem:[#allocation3 + $0x114] sm:$0xf0]  ;;  %v2619_v38 = vld [vmem:[#allocation3 + $0x118] sm:$0xf0] }
 0x520   : > { %2147 = vmatpush.bf16.msra.mxu1 %v2598_v46  ;;  %v2618_v47 = vor.u32 %v2712_v2, %v2617_v36  ;;  %v2622_v57 = vor.u32 %v2711_v6, %v2619_v38  ;;  %v1885_v24 = vpop.permute.xlu1 %1884 }
 0x521   : > { %v1890_v16 = vpop.permute.xlu0 %1889 }
 0x522   : > { %2124 = vmatpush.bf16.msra.mxu2 %v2618_v47  ;;  %2166 = vmatpush.bf16.msra.mxu3 %v2622_v57 }
 0x524   : > { %2148 = vmatpush.bf16.msra.mxu1 %v2590_v26 }
 0x525   : > { %v2710_v19 = vld [vmem:[#allocation3 + $0x104] sm:$0xf0]  ;;  %v2611_v30 = vld [vmem:[#allocation3 + $0x108] sm:$0xf0] }
 0x526   : > { %v2609_v61 = vld [vmem:[#allocation3 + $0x100] sm:$0xf]  ;;  %v2709_v1 = vld [vmem:[#allocation3 + $0x104] sm:$0xf] }
 0x527   : > { %v2610_v4 = vor.u32 %v2710_v19, %v2609_v61  ;;  %v2614_v33 = vor.u32 %v2709_v1, %v2611_v30 }
 0x528   : > { %2149 = vmatpush.bf16.msra.mxu1 %v2582_v27 }
 0x529   : > { %2125 = vmatpush.bf16.msra.mxu2 %v2610_v4  ;;  %2167 = vmatpush.bf16.msra.mxu3 %v2614_v33 }
 0x52c   : > { %2150 = vmatpush.bf16.msra.mxu1 %v2574_v10  ;;  %2623 = vmatmul.msk.bf16.vlgmr.msra.gmra.mxu2 %vm1383_vm11, %v2478_v15 }
 0x52d   : > { %2624 = vmatmul.msk.bf16.vlgmr.msra.gmra.mxu3 %vm1383_vm11, %v2478_v15 }
 0x530   : > { %2151 = vmatpush.bf16.msra.mxu1 %v2566_v40 }
 0x534   : > { %2152 = vmatpush.bf16.msra.mxu1 %v2558_v8 }
 0x538   : > { %2153 = vmatpush.bf16.msra.mxu1 %v2550_v22 }
 0x53b   : > { %2154 = vmatmul.bf16.vlgmr.msra.gmra.mxu1 %v4102_v42 }
 0x598   : > { %v2099_v17 = vpop.f32.mrf.mxu1 }
 0x599   : > { %v2100_v44 = vadd.f32 %v2099_v17, %v1885_v24  ;;  %v2141_v59 = vpop.f32.mrf.mxu0 }
 0x59a   : > { %v2142_v42 = vadd.f32 %v2141_v59, %v1885_v24 }
 0x59b   : > { %v2113_v50 = vpop.f32.mrf.mxu3 }
 0x59c   : > { %v2114_v37 = vadd.f32 %v2113_v50, %v2100_v44 }
 0x5a0   : > { %v2101_v51 = vpop.f32.mrf.mxu1 }
 0x5a1   : > { %v2102_v12 = vadd.f32 %v2101_v51, %v1890_v16  ;;  %v2143_v14 = vpop.f32.mrf.mxu0 }
 0x5a2   : > { %v2144_v28 = vadd.f32 %v2143_v14, %v1890_v16 }
 0x5a3   : > { %v2115_v52 = vpop.f32.mrf.mxu3 }
 0x5a4   : > { %v2116_v43 = vadd.f32 %v2115_v52, %v2102_v12 }
 0x5af   : > { %v2127_v31 = vpop.f32.mrf.mxu2 }
 0x5b0   : > { %v2128_v60 = vadd.f32 %v2127_v31, %v2114_v37  ;;  %v2169_v18 = vpop.f32.mrf.mxu3 }
 0x5b2   : > { %v2174_v5 = vmax.f32 %v2128_v60, 0.0 }
 0x5b4   : > { %2178 = vst [vmem:[%s465_s17] sm:$0xff] %v2174_v5 }
 0x5b7   : > { %v2129_v45 = vpop.f32.mrf.mxu2 }
 0x5b8   : > { %v2155_v49 = vpop.f32.mrf.mxu1  ;;  %v2130_v58 = vadd.f32 %v2129_v45, %v2116_v43  ;;  %v2171_v53 = vpop.f32.mrf.mxu3 }
 0x5b9   : > { %v2156_v56 = vadd.f32 %v2155_v49, %v2142_v42 }
 0x5ba   : > { %v2176_v63 = vmax.f32 %v2130_v58, 0.0 }
 0x5bb   : > { %v2170_v48 = vadd.f32 %v2169_v18, %v2156_v56 }
 0x5bc   : > { %2180 = vst [vmem:[%s465_s17 + $0x10] sm:$0xff] %v2176_v63 }
 0x5bd   : > { %v2175_v23 = vmax.f32 %v2170_v48, 0.0 }
 0x5bf   : > { %2179 = vst [vmem:[%s465_s17 + $0x8] sm:$0xff] %v2175_v23 }
 0x5c0   : > { %v2157_v62 = vpop.f32.mrf.mxu1 }
 0x5c1   : > { %v2158_v34 = vadd.f32 %v2157_v62, %v2144_v28 }
 0x5c3   : > { %v2172_v46 = vadd.f32 %v2171_v53, %v2158_v34 }
 0x5c5   : > { %v2177_v55 = vmax.f32 %v2172_v46, 0.0 }
 0x5c7   : > { %2181 = vst [vmem:[%s465_s17 + $0x18] sm:$0xff] %v2177_v55 }
 0x5c8   : > { %2862 = shalt.err (!%p2859_p8)
}
 0x5c9   : > { %s2917_s16 = smov 256  }
 0x5ca   : > { %2718 = dma.vmem_to_hbm [thread:$0]  (%p3026_p5), %s2196_s30, 512, %s2198_s12, %s2183_s29, %s2917_s16, %s2917_s16, %s4200_s15  }
 0x5cb PF: > { %p2730_p9 = scmp.ge.s32.totalorder %s2901_s28, 2  ;;  %s2212_s17 = sand.u32 1, %s2889_s25  }
 0x5cc   : > { %s2213_s1 = scalar_lea.sflag [#allocation6], %s2212_s17 }
 0x5cd   : > { %p2725_p10 = pnand %p2730_p9, %p3030_p6 }
 0x5cf   : > { %p2726_p11 = pneg %p2725_p10 }
 0x5d1   : > { %2884 = dma.done.wait (%p2726_p11), %s2213_s1, 512  }
 0x5d2   : > { %2886 = vsyncadd (%p2726_p11), %s2213_s1, 4294966784  ;;  %s4203_s0 = sld [smem:[#allocation10_spill]]  ;;  %p24_p12 = scmp.ge.s32.totalorder %s3013_s14, 4  }
 0x5d3   : > { %s4204_s25 = smov %s2893_s26  ;;  %s4205_s26 = smov %s2897_s27 }
 0x5d4   : > { %s4207_s28 = smov %s3013_s14  ;;  %26 = sbr.rel (!%p24_p12) target bundleno = 8 (0x8), region = 115 }
 0x5d8   : > { %s4206_s27 = smov %s4203_s0 }
 0x5d9   :  { %2219 = vsyncpa [#allocation5], 1 }
 0x5da   :  { %2221 = vsyncpa [#allocation5 + $0x1], 1 }
 0x5db   :  { %2222 = vsyncpa [#allocation6], 1 }
 0x5dc   :  { %2224 = vsyncpa [#allocation6 + $0x1], 1 }

</bundles_post_ra>
